<compile_context>
chip_gen: v7x
topology: tpu7x:2x2x1
jax: 0.10.0
libtpu: 0.0.40
codegen_flags: <defaults>
</compile_context>

<pallas_src>
import functools

import jax
import jax.numpy as jnp
import numpy as np
from jax.experimental import pallas as pl
from jax.experimental.pallas import tpu as pltpu

_VMEM_LIMIT_BYTES = 48 * 1024 * 1024


# ----------------------------- Pallas kernels ------------------------------

def conv_pool_kernel(cols_ref, w_ref, b_ref, o_ref):
    """Fused conv-as-matmul + bias + ReLU + 2x2 maxpool.

    cols_ref: (4, tm, K) bf16  -- im2col patches for the 4 pool corners,
                                  true K = 9*Cin (no 128 pad, full-dim block)
    w_ref:    (K, Cout)  bf16  -- conv weight, true Cout (no lane pad)
    b_ref:    (1, Cout)  f32
    o_ref:    (tm, Cout) bf16  -- pooled output rows (n, ho, wo) raveled
    """
    w = w_ref[...]
    acc = jnp.dot(cols_ref[0], w, preferred_element_type=jnp.float32)
    for t in range(1, 4):
        acc = jnp.maximum(
            acc, jnp.dot(cols_ref[t], w, preferred_element_type=jnp.float32))
    # max(relu(a_t + b)) == relu(max(a_t) + b)  (constant bias, monotonic ReLU)
    o_ref[...] = jnp.maximum(acc + b_ref[...], 0.0).astype(o_ref.dtype)


def matmul_bias_act_kernel(x_ref, w_ref, b_ref, o_ref, acc_ref, *, relu):
    """o = [relu](x @ w + b); grid (M, N, K), K is the reduction axis."""
    k = pl.program_id(2)

    @pl.when(k == 0)
    def _():
        acc_ref[...] = jnp.zeros_like(acc_ref)

    acc_ref[...] += jnp.dot(x_ref[...], w_ref[...],
                            preferred_element_type=jnp.float32)

    @pl.when(k == pl.num_programs(2) - 1)
    def _():
        y = acc_ref[...] + b_ref[...]
        if relu:
            y = jnp.maximum(y, 0.0)
        o_ref[...] = y.astype(o_ref.dtype)


# ------------------------------- helpers ------------------------------------

def _round_up(n, m):
    return ((n + m - 1) // m) * m


def _row_tile(m, cap, align=16):
    """Return (tile, padded_m) with tile | padded_m and tile <= cap (if m>cap).

    Fixes the old full-dim fallback: if no divisor <= cap exists, the rows are
    padded up to a tile multiple instead of using one huge VMEM block.
    """
    if m <= cap:
        return m, m                       # full-dim block is always legal
    t = (cap // align) * align
    while t >= align:                     # prefer an exact divisor (no pad)
        if m % t == 0:
            return t, m
        t -= align
    t = (cap // align) * align            # fall back to padding the rows
    return t, _round_up(m, t)


def _k_tile(kp, cap=2048):
    for t in (2048, 1024, 512, 256, 128):
        if t <= cap and kp % t == 0:
            return t
    return kp


def _pad_last(x, target):
    pad = target - x.shape[-1]
    return x if pad == 0 else jnp.pad(x, [(0, 0)] * (x.ndim - 1) + [(0, pad)])


# ------------------------------- wrappers ------------------------------------

def conv3x3_relu_pool(x, w, b):
    """maxpool2x2(relu(conv3x3 SAME + b)) fused; x NHWC, w (9*Cin, Cout) bf16."""
    x = x.astype(jnp.bfloat16)
    N, H, W, Cin = x.shape
    Ho, Wo = H // 2, W // 2
    K, Cout = w.shape
    assert K == 9 * Cin

    # TODO(synk): im2col stays XLA glue (true K, no 128 pad); in-kernel halo
    # DMA + tap construction would remove the remaining 9x tap duplication.
    xp = jnp.pad(x, ((0, 0), (1, 1), (1, 1), (0, 0)))
    corners = []
    for pi in (0, 1):
        for pj in (0, 1):
            taps = [xp[:, pi + dy:pi + dy + 2 * Ho:2,
                       pj + dx:pj + dx + 2 * Wo:2, :]
                    for dy in range(3) for dx in range(3)]
            corners.append(
                jnp.concatenate(taps, axis=-1).reshape(N * Ho * Wo, K))
    cols = jnp.stack(corners, axis=0)                     # (4, M, K) bf16

    M = N * Ho * Wo
    tm, Mp = _row_tile(M, 1024)
    if Mp != M:
        cols = jnp.pad(cols, ((0, 0), (0, Mp - M), (0, 0)))

    out = pl.pallas_call(
        conv_pool_kernel,
        out_shape=jax.ShapeDtypeStruct((Mp, Cout), jnp.bfloat16),
        grid=(Mp // tm,),
        in_specs=[pl.BlockSpec((4, tm, K), lambda g: (0, g, 0)),
                  pl.BlockSpec((K, Cout), lambda g: (0, 0)),
                  pl.BlockSpec((1, Cout), lambda g: (0, 0))],
        out_specs=pl.BlockSpec((tm, Cout), lambda g: (g, 0)),
        compiler_params=pltpu.CompilerParams(
            dimension_semantics=("parallel",),
            vmem_limit_bytes=_VMEM_LIMIT_BYTES),
    )(cols, w, b)
    return out[:M].reshape(N, Ho, Wo, Cout)


def matmul_bias_act(x, w_pad, b_pad, *, relu, out_dtype=jnp.float32):
    """[relu](x @ w + b); w_pad (Kp, Np) bf16 pre-padded to 128 multiples."""
    x = x.astype(jnp.bfloat16)
    M = x.shape[0]
    Kp, Np = w_pad.shape
    x = _pad_last(x, Kp)

    tm, Mp = _row_tile(M, 256)
    if Mp != M:
        x = jnp.pad(x, ((0, Mp - M), (0, 0)))
    tk = _k_tile(Kp)
    tn = 256 if Np % 256 == 0 else 128    # >=2 parallel N tiles for fc1 (v7x)

    kern = functools.partial(matmul_bias_act_kernel, relu=relu)
    out = pl.pallas_call(
        kern,
        out_shape=jax.ShapeDtypeStruct((Mp, Np), out_dtype),
        grid=(Mp // tm, Np // tn, Kp // tk),
        in_specs=[pl.BlockSpec((tm, tk), lambda i, j, k: (i, k)),
                  pl.BlockSpec((tk, tn), lambda i, j, k: (k, j)),
                  pl.BlockSpec((1, tn), lambda i, j, k: (0, j))],
        out_specs=pl.BlockSpec((tm, tn), lambda i, j, k: (i, j)),
        scratch_shapes=[pltpu.VMEM((tm, tn), jnp.float32)],
        compiler_params=pltpu.CompilerParams(
            dimension_semantics=("parallel", "parallel", "arbitrary"),
            vmem_limit_bytes=_VMEM_LIMIT_BYTES),
    )(x, w_pad, b_pad)
    return out[:M]


# ---------------------------- params & forward -------------------------------

def init_params(key, n_class, imsize):
    assert imsize % 8 == 0, "Imsize must be divisible by 8"
    n_feat = imsize // 8

    def uinit(k, shape, fan_in):
        bound = 1.0 / np.sqrt(fan_in)
        return jax.random.uniform(k, shape, jnp.float32, -bound, bound)

    ks = jax.random.split(key, 10)
    d = 64 * n_feat * n_feat
    return {
        # conv weights stored HWIO == torch OIHW.transpose(2,3,1,0)
        "w1": uinit(ks[0], (3, 3, 3, 16), 3 * 9),
        "b1": uinit(ks[1], (16,), 3 * 9),
        "w2": uinit(ks[2], (3, 3, 16, 32), 16 * 9),
        "b2": uinit(ks[3], (32,), 16 * 9),
        "w3": uinit(ks[4], (3, 3, 32, 64), 32 * 9),
        "b3": uinit(ks[5], (64,), 32 * 9),
        # fc1 rows stored (in, out) with input features in NHWC-flatten
        # (h, w, c) order; a torch checkpoint needs a one-time row permutation.
        "wf1": uinit(ks[6], (d, 500), d),
        "bf1": uinit(ks[7], (500,), d),
        "wf2": uinit(ks[8], (500, n_class), 500),
        "bf2": uinit(ks[9], (n_class,), 500),
    }


def prepare_params(p):
    """One-time weight prep: conv weights true-K/true-Cout bf16, fc padded."""
    prep = {}
    for i in (1, 2, 3):
        w = p[f"w{i}"]
        kh, kw, cin, cout = w.shape
        prep[f"w{i}"] = w.reshape(kh * kw * cin, cout).astype(jnp.bfloat16)
        prep[f"b{i}"] = p[f"b{i}"].astype(jnp.float32).reshape(1, cout)
    for name in ("f1", "f2"):
        w, b = p[f"w{name}"], p[f"b{name}"]
        K, N = w.shape
        Kp, Np = _round_up(K, 128), _round_up(N, 128)
        prep[f"w{name}"] = jnp.pad(
            w, ((0, Kp - K), (0, Np - N))).astype(jnp.bfloat16)
        prep[f"b{name}"] = jnp.pad(
            b, (0, Np - N)).astype(jnp.float32).reshape(1, Np)
    return prep


@functools.partial(jax.jit, static_argnames=("n_class",))
def net_forward(prep, x_nchw, *, n_class):
    # NCHW -> NHWC; XLA fuses this transpose into conv1's im2col gather
    # (pad + strided slices + concat), so there is no separate HBM round trip.
    x = jnp.transpose(x_nchw, (0, 2, 3, 1))
    x = conv3x3_relu_pool(x, prep["w1"], prep["b1"])     # conv1+relu+pool fused
    x = conv3x3_relu_pool(x, prep["w2"], prep["b2"])     # conv2+relu+pool fused
    x = conv3x3_relu_pool(x, prep["w3"], prep["b3"])     # conv3+relu+pool fused
    # NHWC flatten; wf1 rows are stored in matching (h, w, c) order.
    x = x.reshape(x.shape[0], -1)
    # TODO(synk): nn.Dropout(0.25) treated as inference-mode identity (no RNG).
    x = matmul_bias_act(x, prep["wf1"], prep["bf1"], relu=True,
                        out_dtype=jnp.bfloat16)
    # fc1's padded output cols (500..511) are zero and meet fc2's zero K rows.
    x = matmul_bias_act(x, prep["wf2"], prep["bf2"], relu=False,
                        out_dtype=jnp.float32)
    return x[:, :n_class]


def net_forward_ref(p, x_nchw):
    """Pure-JAX reference (same bf16-operand / f32-accumulate math)."""
    bf16 = jnp.bfloat16
    x = jnp.transpose(x_nchw, (0, 2, 3, 1))

    def conv_relu(x, w, b):
        y = jax.lax.conv_general_dilated(
            x.astype(bf16), w.astype(bf16), (1, 1), "SAME",
            dimension_numbers=("NHWC", "HWIO", "NHWC"),
            preferred_element_type=jnp.float32)
        return jax.nn.relu(y + b)

    def pool(x):
        return jax.lax.reduce_window(x, -jnp.inf, jax.lax.max,
                                     (1, 2, 2, 1), (1, 2, 2, 1), "VALID")

    x = pool(conv_relu(x, p["w1"], p["b1"])).astype(bf16)
    x = pool(conv_relu(x, p["w2"], p["b2"])).astype(bf16)
    x = pool(conv_relu(x, p["w3"], p["b3"])).astype(bf16)
    x = x.reshape(x.shape[0], -1)          # NHWC flatten, matches wf1 rows
    x = jax.nn.relu(jnp.dot(x, p["wf1"].astype(bf16),
                            preferred_element_type=jnp.float32) + p["bf1"])
    x = x.astype(bf16)
    x = jnp.dot(x, p["wf2"].astype(bf16),
                preferred_element_type=jnp.float32) + p["bf2"]
    return x


if __name__ == "__main__":
    n_class, imsize, batch = 5, 16, 2
    key = jax.random.PRNGKey(0)
    pkey, xkey = jax.random.split(key)
    params = init_params(pkey, n_class, imsize)
    prep = prepare_params(params)
    x = jax.random.normal(xkey, (batch, 3, imsize, imsize), jnp.float32)

    out = jax.block_until_ready(net_forward(prep, x, n_class=n_class))
    ref = jax.block_until_ready(net_forward_ref(params, x))
    assert out.shape == (batch, n_class)
    np.testing.assert_allclose(np.asarray(out, dtype=np.float32),
                               np.asarray(ref, dtype=np.float32),
                               rtol=2e-2, atol=2e-2)
    print("KERNEL_OK")
</pallas_src>

<mosaic_0001>
module attributes {stable_mosaic.version = 11 : i64} {
  func.func @conv_pool_kernel(%arg0: i32, %arg1: memref<4x128x27xbf16, #tpu.memory_space<vmem>>, %arg2: memref<27x16xbf16, #tpu.memory_space<vmem>>, %arg3: memref<1x16xf32, #tpu.memory_space<vmem>>, %arg4: memref<128x16xbf16, #tpu.memory_space<vmem>>) attributes {dimension_semantics = [#tpu.dimension_semantics<parallel>], iteration_bounds = array<i64: 1>, scalar_prefetch = 0 : i64, scratch_operands = 0 : i64, tpu.core_type = #tpu.core_type<tc>, window_params = [{transform_indices = @transform_0, window_bounds = array<i64: 4, 128, 27>}, {pipeline_mode = #tpu.pipeline_mode<synchronous>, transform_indices = @transform_1, window_bounds = array<i64: 27, 16>}, {pipeline_mode = #tpu.pipeline_mode<synchronous>, transform_indices = @transform_2, window_bounds = array<i64: 1, 16>}, {transform_indices = @transform_3, window_bounds = array<i64: 128, 16>}]} {
    %c0 = arith.constant 0 : index
    %c0_0 = arith.constant 0 : index
    %0 = vector.load %arg2[%c0, %c0_0] : memref<27x16xbf16, #tpu.memory_space<vmem>>, vector<27x16xbf16>
    %c0_1 = arith.constant 0 : index
    %c0_2 = arith.constant 0 : index
    %c0_3 = arith.constant 0 : index
    %1 = vector.load %arg1[%c0_1, %c0_2, %c0_3] : memref<4x128x27xbf16, #tpu.memory_space<vmem>>, vector<1x128x27xbf16>
    %2 = vector.shape_cast %1 : vector<1x128x27xbf16> to vector<128x27xbf16>
    %cst = arith.constant dense<0.000000e+00> : vector<128x16xf32>
    %3 = tpu.matmul %2, %0, %cst {dimension_numbers = #tpu.dot_dimension_numbers<[1], [0], [0], [1], [0, 0, 1, 1], [], []>} : vector<128x27xbf16>, vector<27x16xbf16>, vector<128x16xf32> -> vector<128x16xf32>
    %c1 = arith.constant 1 : index
    %c0_4 = arith.constant 0 : index
    %c0_5 = arith.constant 0 : index
    %4 = vector.load %arg1[%c1, %c0_4, %c0_5] : memref<4x128x27xbf16, #tpu.memory_space<vmem>>, vector<1x128x27xbf16>
    %5 = vector.shape_cast %4 : vector<1x128x27xbf16> to vector<128x27xbf16>
    %cst_6 = arith.constant dense<0.000000e+00> : vector<128x16xf32>
    %6 = tpu.matmul %5, %0, %cst_6 {dimension_numbers = #tpu.dot_dimension_numbers<[1], [0], [0], [1], [0, 0, 1, 1], [], []>} : vector<128x27xbf16>, vector<27x16xbf16>, vector<128x16xf32> -> vector<128x16xf32>
    %7 = arith.maximumf %3, %6 : vector<128x16xf32>
    %c2 = arith.constant 2 : index
    %c0_7 = arith.constant 0 : index
    %c0_8 = arith.constant 0 : index
    %8 = vector.load %arg1[%c2, %c0_7, %c0_8] : memref<4x128x27xbf16, #tpu.memory_space<vmem>>, vector<1x128x27xbf16>
    %9 = vector.shape_cast %8 : vector<1x128x27xbf16> to vector<128x27xbf16>
    %cst_9 = arith.constant dense<0.000000e+00> : vector<128x16xf32>
    %10 = tpu.matmul %9, %0, %cst_9 {dimension_numbers = #tpu.dot_dimension_numbers<[1], [0], [0], [1], [0, 0, 1, 1], [], []>} : vector<128x27xbf16>, vector<27x16xbf16>, vector<128x16xf32> -> vector<128x16xf32>
    %11 = arith.maximumf %7, %10 : vector<128x16xf32>
    %c3 = arith.constant 3 : index
    %c0_10 = arith.constant 0 : index
    %c0_11 = arith.constant 0 : index
    %12 = vector.load %arg1[%c3, %c0_10, %c0_11] : memref<4x128x27xbf16, #tpu.memory_space<vmem>>, vector<1x128x27xbf16>
    %13 = vector.shape_cast %12 : vector<1x128x27xbf16> to vector<128x27xbf16>
    %cst_12 = arith.constant dense<0.000000e+00> : vector<128x16xf32>
    %14 = tpu.matmul %13, %0, %cst_12 {dimension_numbers = #tpu.dot_dimension_numbers<[1], [0], [0], [1], [0, 0, 1, 1], [], []>} : vector<128x27xbf16>, vector<27x16xbf16>, vector<128x16xf32> -> vector<128x16xf32>
    %15 = arith.maximumf %11, %14 : vector<128x16xf32>
    %c0_13 = arith.constant 0 : index
    %c0_14 = arith.constant 0 : index
    %16 = vector.load %arg3[%c0_13, %c0_14] : memref<1x16xf32, #tpu.memory_space<vmem>>, vector<1x16xf32>
    %17 = vector.broadcast %16 : vector<1x16xf32> to vector<128x16xf32>
    %18 = arith.addf %15, %17 : vector<128x16xf32>
    %cst_15 = arith.constant 0.000000e+00 : f32
    %19 = vector.broadcast %cst_15 : f32 to vector<128x16xf32>
    %20 = arith.maximumf %18, %19 : vector<128x16xf32>
    %21 = arith.truncf %20 : vector<128x16xf32> to vector<128x16xbf16>
    %c0_16 = arith.constant 0 : index
    %c0_17 = arith.constant 0 : index
    %22 = vector.load %arg4[%c0_16, %c0_17] : memref<128x16xbf16, #tpu.memory_space<vmem>>, vector<128x16xbf16>
    tpu.vector_store %arg4[%c0_16, %c0_17], %21 {strides = array<i32>} : memref<128x16xbf16, #tpu.memory_space<vmem>>, vector<128x16xbf16>,
    return
  }
  func.func @transform_0(%arg0: i32) -> (i32, i32, i32) {
    %c0_i32 = arith.constant 0 : i32
    %c0_i32_0 = arith.constant 0 : i32
    %c0_i32_1 = arith.constant 0 : i32
    return %c0_i32, %arg0, %c0_i32_0 : i32, i32, i32
  }
  func.func @transform_1(%arg0: i32) -> (i32, i32) {
    %c0_i32 = arith.constant 0 : i32
    %c0_i32_0 = arith.constant 0 : i32
    %c0_i32_1 = arith.constant 0 : i32
    return %c0_i32, %c0_i32_0 : i32, i32
  }
  func.func @transform_2(%arg0: i32) -> (i32, i32) {
    %c0_i32 = arith.constant 0 : i32
    %c0_i32_0 = arith.constant 0 : i32
    %c0_i32_1 = arith.constant 0 : i32
    return %c0_i32, %c0_i32_0 : i32, i32
  }
  func.func @transform_3(%arg0: i32) -> (i32, i32) {
    %c0_i32 = arith.constant 0 : i32
    %c0_i32_0 = arith.constant 0 : i32
    return %arg0, %c0_i32 : i32, i32
  }
}

module attributes {stable_mosaic.version = 11 : i64} {
  func.func @conv_pool_kernel(%arg0: i32, %arg1: memref<4x32x144xbf16, #tpu.memory_space<vmem>>, %arg2: memref<144x32xbf16, #tpu.memory_space<vmem>>, %arg3: memref<1x32xf32, #tpu.memory_space<vmem>>, %arg4: memref<32x32xbf16, #tpu.memory_space<vmem>>) attributes {dimension_semantics = [#tpu.dimension_semantics<parallel>], iteration_bounds = array<i64: 1>, scalar_prefetch = 0 : i64, scratch_operands = 0 : i64, tpu.core_type = #tpu.core_type<tc>, window_params = [{transform_indices = @transform_0, window_bounds = array<i64: 4, 32, 144>}, {pipeline_mode = #tpu.pipeline_mode<synchronous>, transform_indices = @transform_1, window_bounds = array<i64: 144, 32>}, {pipeline_mode = #tpu.pipeline_mode<synchronous>, transform_indices = @transform_2, window_bounds = array<i64: 1, 32>}, {transform_indices = @transform_3, window_bounds = array<i64: 32, 32>}]} {
    %c0 = arith.constant 0 : index
    %c0_0 = arith.constant 0 : index
    %0 = vector.load %arg2[%c0, %c0_0] : memref<144x32xbf16, #tpu.memory_space<vmem>>, vector<144x32xbf16>
    %c0_1 = arith.constant 0 : index
    %c0_2 = arith.constant 0 : index
    %c0_3 = arith.constant 0 : index
    %1 = vector.load %arg1[%c0_1, %c0_2, %c0_3] : memref<4x32x144xbf16, #tpu.memory_space<vmem>>, vector<1x32x144xbf16>
    %2 = vector.shape_cast %1 : vector<1x32x144xbf16> to vector<32x144xbf16>
    %cst = arith.constant dense<0.000000e+00> : vector<32x32xf32>
    %3 = tpu.matmul %2, %0, %cst {dimension_numbers = #tpu.dot_dimension_numbers<[1], [0], [0], [1], [0, 0, 1, 1], [], []>} : vector<32x144xbf16>, vector<144x32xbf16>, vector<32x32xf32> -> vector<32x32xf32>
    %c1 = arith.constant 1 : index
    %c0_4 = arith.constant 0 : index
    %c0_5 = arith.constant 0 : index
    %4 = vector.load %arg1[%c1, %c0_4, %c0_5] : memref<4x32x144xbf16, #tpu.memory_space<vmem>>, vector<1x32x144xbf16>
    %5 = vector.shape_cast %4 : vector<1x32x144xbf16> to vector<32x144xbf16>
    %cst_6 = arith.constant dense<0.000000e+00> : vector<32x32xf32>
    %6 = tpu.matmul %5, %0, %cst_6 {dimension_numbers = #tpu.dot_dimension_numbers<[1], [0], [0], [1], [0, 0, 1, 1], [], []>} : vector<32x144xbf16>, vector<144x32xbf16>, vector<32x32xf32> -> vector<32x32xf32>
    %7 = arith.maximumf %3, %6 : vector<32x32xf32>
    %c2 = arith.constant 2 : index
    %c0_7 = arith.constant 0 : index
    %c0_8 = arith.constant 0 : index
    %8 = vector.load %arg1[%c2, %c0_7, %c0_8] : memref<4x32x144xbf16, #tpu.memory_space<vmem>>, vector<1x32x144xbf16>
    %9 = vector.shape_cast %8 : vector<1x32x144xbf16> to vector<32x144xbf16>
    %cst_9 = arith.constant dense<0.000000e+00> : vector<32x32xf32>
    %10 = tpu.matmul %9, %0, %cst_9 {dimension_numbers = #tpu.dot_dimension_numbers<[1], [0], [0], [1], [0, 0, 1, 1], [], []>} : vector<32x144xbf16>, vector<144x32xbf16>, vector<32x32xf32> -> vector<32x32xf32>
    %11 = arith.maximumf %7, %10 : vector<32x32xf32>
    %c3 = arith.constant 3 : index
    %c0_10 = arith.constant 0 : index
    %c0_11 = arith.constant 0 : index
    %12 = vector.load %arg1[%c3, %c0_10, %c0_11] : memref<4x32x144xbf16, #tpu.memory_space<vmem>>, vector<1x32x144xbf16>
    %13 = vector.shape_cast %12 : vector<1x32x144xbf16> to vector<32x144xbf16>
    %cst_12 = arith.constant dense<0.000000e+00> : vector<32x32xf32>
    %14 = tpu.matmul %13, %0, %cst_12 {dimension_numbers = #tpu.dot_dimension_numbers<[1], [0], [0], [1], [0, 0, 1, 1], [], []>} : vector<32x144xbf16>, vector<144x32xbf16>, vector<32x32xf32> -> vector<32x32xf32>
    %15 = arith.maximumf %11, %14 : vector<32x32xf32>
    %c0_13 = arith.constant 0 : index
    %c0_14 = arith.constant 0 : index
    %16 = vector.load %arg3[%c0_13, %c0_14] : memref<1x32xf32, #tpu.memory_space<vmem>>, vector<1x32xf32>
    %17 = vector.broadcast %16 : vector<1x32xf32> to vector<32x32xf32>
    %18 = arith.addf %15, %17 : vector<32x32xf32>
    %cst_15 = arith.constant 0.000000e+00 : f32
    %19 = vector.broadcast %cst_15 : f32 to vector<32x32xf32>
    %20 = arith.maximumf %18, %19 : vector<32x32xf32>
    %21 = arith.truncf %20 : vector<32x32xf32> to vector<32x32xbf16>
    %c0_16 = arith.constant 0 : index
    %c0_17 = arith.constant 0 : index
    %22 = vector.load %arg4[%c0_16, %c0_17] : memref<32x32xbf16, #tpu.memory_space<vmem>>, vector<32x32xbf16>
    tpu.vector_store %arg4[%c0_16, %c0_17], %21 {strides = array<i32>} : memref<32x32xbf16, #tpu.memory_space<vmem>>, vector<32x32xbf16>,
    return
  }
  func.func @transform_0(%arg0: i32) -> (i32, i32, i32) {
    %c0_i32 = arith.constant 0 : i32
    %c0_i32_0 = arith.constant 0 : i32
    %c0_i32_1 = arith.constant 0 : i32
    return %c0_i32, %arg0, %c0_i32_0 : i32, i32, i32
  }
  func.func @transform_1(%arg0: i32) -> (i32, i32) {
    %c0_i32 = arith.constant 0 : i32
    %c0_i32_0 = arith.constant 0 : i32
    %c0_i32_1 = arith.constant 0 : i32
    return %c0_i32, %c0_i32_0 : i32, i32
  }
  func.func @transform_2(%arg0: i32) -> (i32, i32) {
    %c0_i32 = arith.constant 0 : i32
    %c0_i32_0 = arith.constant 0 : i32
    %c0_i32_1 = arith.constant 0 : i32
    return %c0_i32, %c0_i32_0 : i32, i32
  }
  func.func @transform_3(%arg0: i32) -> (i32, i32) {
    %c0_i32 = arith.constant 0 : i32
    %c0_i32_0 = arith.constant 0 : i32
    return %arg0, %c0_i32 : i32, i32
  }
}

module attributes {stable_mosaic.version = 11 : i64} {
  func.func @conv_pool_kernel(%arg0: i32, %arg1: memref<4x8x288xbf16, #tpu.memory_space<vmem>>, %arg2: memref<288x64xbf16, #tpu.memory_space<vmem>>, %arg3: memref<1x64xf32, #tpu.memory_space<vmem>>, %arg4: memref<8x64xbf16, #tpu.memory_space<vmem>>) attributes {dimension_semantics = [#tpu.dimension_semantics<parallel>], iteration_bounds = array<i64: 1>, scalar_prefetch = 0 : i64, scratch_operands = 0 : i64, tpu.core_type = #tpu.core_type<tc>, window_params = [{transform_indices = @transform_0, window_bounds = array<i64: 4, 8, 288>}, {pipeline_mode = #tpu.pipeline_mode<synchronous>, transform_indices = @transform_1, window_bounds = array<i64: 288, 64>}, {pipeline_mode = #tpu.pipeline_mode<synchronous>, transform_indices = @transform_2, window_bounds = array<i64: 1, 64>}, {transform_indices = @transform_3, window_bounds = array<i64: 8, 64>}]} {
    %c0 = arith.constant 0 : index
    %c0_0 = arith.constant 0 : index
    %0 = vector.load %arg2[%c0, %c0_0] : memref<288x64xbf16, #tpu.memory_space<vmem>>, vector<288x64xbf16>
    %c0_1 = arith.constant 0 : index
    %c0_2 = arith.constant 0 : index
    %c0_3 = arith.constant 0 : index
    %1 = vector.load %arg1[%c0_1, %c0_2, %c0_3] : memref<4x8x288xbf16, #tpu.memory_space<vmem>>, vector<1x8x288xbf16>
    %2 = vector.shape_cast %1 : vector<1x8x288xbf16> to vector<8x288xbf16>
    %cst = arith.constant dense<0.000000e+00> : vector<8x64xf32>
    %3 = tpu.matmul %2, %0, %cst {dimension_numbers = #tpu.dot_dimension_numbers<[1], [0], [0], [1], [0, 0, 1, 1], [], []>} : vector<8x288xbf16>, vector<288x64xbf16>, vector<8x64xf32> -> vector<8x64xf32>
    %c1 = arith.constant 1 : index
    %c0_4 = arith.constant 0 : index
    %c0_5 = arith.constant 0 : index
    %4 = vector.load %arg1[%c1, %c0_4, %c0_5] : memref<4x8x288xbf16, #tpu.memory_space<vmem>>, vector<1x8x288xbf16>
    %5 = vector.shape_cast %4 : vector<1x8x288xbf16> to vector<8x288xbf16>
    %cst_6 = arith.constant dense<0.000000e+00> : vector<8x64xf32>
    %6 = tpu.matmul %5, %0, %cst_6 {dimension_numbers = #tpu.dot_dimension_numbers<[1], [0], [0], [1], [0, 0, 1, 1], [], []>} : vector<8x288xbf16>, vector<288x64xbf16>, vector<8x64xf32> -> vector<8x64xf32>
    %7 = arith.maximumf %3, %6 : vector<8x64xf32>
    %c2 = arith.constant 2 : index
    %c0_7 = arith.constant 0 : index
    %c0_8 = arith.constant 0 : index
    %8 = vector.load %arg1[%c2, %c0_7, %c0_8] : memref<4x8x288xbf16, #tpu.memory_space<vmem>>, vector<1x8x288xbf16>
    %9 = vector.shape_cast %8 : vector<1x8x288xbf16> to vector<8x288xbf16>
    %cst_9 = arith.constant dense<0.000000e+00> : vector<8x64xf32>
    %10 = tpu.matmul %9, %0, %cst_9 {dimension_numbers = #tpu.dot_dimension_numbers<[1], [0], [0], [1], [0, 0, 1, 1], [], []>} : vector<8x288xbf16>, vector<288x64xbf16>, vector<8x64xf32> -> vector<8x64xf32>
    %11 = arith.maximumf %7, %10 : vector<8x64xf32>
    %c3 = arith.constant 3 : index
    %c0_10 = arith.constant 0 : index
    %c0_11 = arith.constant 0 : index
    %12 = vector.load %arg1[%c3, %c0_10, %c0_11] : memref<4x8x288xbf16, #tpu.memory_space<vmem>>, vector<1x8x288xbf16>
    %13 = vector.shape_cast %12 : vector<1x8x288xbf16> to vector<8x288xbf16>
    %cst_12 = arith.constant dense<0.000000e+00> : vector<8x64xf32>
    %14 = tpu.matmul %13, %0, %cst_12 {dimension_numbers = #tpu.dot_dimension_numbers<[1], [0], [0], [1], [0, 0, 1, 1], [], []>} : vector<8x288xbf16>, vector<288x64xbf16>, vector<8x64xf32> -> vector<8x64xf32>
    %15 = arith.maximumf %11, %14 : vector<8x64xf32>
    %c0_13 = arith.constant 0 : index
    %c0_14 = arith.constant 0 : index
    %16 = vector.load %arg3[%c0_13, %c0_14] : memref<1x64xf32, #tpu.memory_space<vmem>>, vector<1x64xf32>
    %17 = vector.broadcast %16 : vector<1x64xf32> to vector<8x64xf32>
    %18 = arith.addf %15, %17 : vector<8x64xf32>
    %cst_15 = arith.constant 0.000000e+00 : f32
    %19 = vector.broadcast %cst_15 : f32 to vector<8x64xf32>
    %20 = arith.maximumf %18, %19 : vector<8x64xf32>
    %21 = arith.truncf %20 : vector<8x64xf32> to vector<8x64xbf16>
    %c0_16 = arith.constant 0 : index
    %c0_17 = arith.constant 0 : index
    %22 = vector.load %arg4[%c0_16, %c0_17] : memref<8x64xbf16, #tpu.memory_space<vmem>>, vector<8x64xbf16>
    tpu.vector_store %arg4[%c0_16, %c0_17], %21 {strides = array<i32>} : memref<8x64xbf16, #tpu.memory_space<vmem>>, vector<8x64xbf16>,
    return
  }
  func.func @transform_0(%arg0: i32) -> (i32, i32, i32) {
    %c0_i32 = arith.constant 0 : i32
    %c0_i32_0 = arith.constant 0 : i32
    %c0_i32_1 = arith.constant 0 : i32
    return %c0_i32, %arg0, %c0_i32_0 : i32, i32, i32
  }
  func.func @transform_1(%arg0: i32) -> (i32, i32) {
    %c0_i32 = arith.constant 0 : i32
    %c0_i32_0 = arith.constant 0 : i32
    %c0_i32_1 = arith.constant 0 : i32
    return %c0_i32, %c0_i32_0 : i32, i32
  }
  func.func @transform_2(%arg0: i32) -> (i32, i32) {
    %c0_i32 = arith.constant 0 : i32
    %c0_i32_0 = arith.constant 0 : i32
    %c0_i32_1 = arith.constant 0 : i32
    return %c0_i32, %c0_i32_0 : i32, i32
  }
  func.func @transform_3(%arg0: i32) -> (i32, i32) {
    %c0_i32 = arith.constant 0 : i32
    %c0_i32_0 = arith.constant 0 : i32
    return %arg0, %c0_i32 : i32, i32
  }
}

module attributes {stable_mosaic.version = 11 : i64} {
  func.func @matmul_bias_act_kernel(%arg0: i32, %arg1: i32, %arg2: i32, %arg3: memref<2x256xbf16, #tpu.memory_space<vmem>>, %arg4: memref<256x256xbf16, #tpu.memory_space<vmem>>, %arg5: memref<1x256xf32, #tpu.memory_space<vmem>>, %arg6: memref<2x256xbf16, #tpu.memory_space<vmem>>, %arg7: memref<2x256xf32, #tpu.memory_space<vmem>>) attributes {dimension_semantics = [#tpu.dimension_semantics<parallel>, #tpu.dimension_semantics<parallel>, #tpu.dimension_semantics<arbitrary>], iteration_bounds = array<i64: 1, 2, 1>, scalar_prefetch = 0 : i64, scratch_operands = 1 : i64, tpu.core_type = #tpu.core_type<tc>, window_params = [{transform_indices = @transform_0, window_bounds = array<i64: 2, 256>}, {transform_indices = @transform_1, window_bounds = array<i64: 256, 256>}, {transform_indices = @transform_2, window_bounds = array<i64: 1, 256>}, {transform_indices = @transform_3, window_bounds = array<i64: 2, 256>}]} {
    %c0_i32 = arith.constant 0 : i32
    %0 = arith.cmpi eq, %arg2, %c0_i32 : i32
    %1 = arith.extui %0 : i1 to i32
    %c0_i32_0 = arith.constant 0 : i32
    %2 = arith.cmpi ne, %1, %c0_i32_0 : i32
    scf.if %2 {
      %cst_10 = arith.constant 0.000000e+00 : f32
      %12 = vector.broadcast %cst_10 : f32 to vector<2x256xf32>
      %c0_11 = arith.constant 0 : index
      %c0_12 = arith.constant 0 : index
      %13 = vector.load %arg7[%c0_11, %c0_12] : memref<2x256xf32, #tpu.memory_space<vmem>>, vector<2x256xf32>
      tpu.vector_store %arg7[%c0_11, %c0_12], %12 {strides = array<i32>} : memref<2x256xf32, #tpu.memory_space<vmem>>, vector<2x256xf32>,
    } else {
    }
    %c0 = arith.constant 0 : index
    %c0_1 = arith.constant 0 : index
    %3 = vector.load %arg7[%c0, %c0_1] : memref<2x256xf32, #tpu.memory_space<vmem>>, vector<2x256xf32>
    %c0_2 = arith.constant 0 : index
    %c0_3 = arith.constant 0 : index
    %4 = vector.load %arg3[%c0_2, %c0_3] : memref<2x256xbf16, #tpu.memory_space<vmem>>, vector<2x256xbf16>
    %c0_4 = arith.constant 0 : index
    %c0_5 = arith.constant 0 : index
    %5 = vector.load %arg4[%c0_4, %c0_5] : memref<256x256xbf16, #tpu.memory_space<vmem>>, vector<256x256xbf16>
    %cst = arith.constant dense<0.000000e+00> : vector<2x256xf32>
    %6 = tpu.matmul %4, %5, %cst {dimension_numbers = #tpu.dot_dimension_numbers<[1], [0], [0], [1], [0, 0, 1, 1], [], []>} : vector<2x256xbf16>, vector<256x256xbf16>, vector<2x256xf32> -> vector<2x256xf32>
    %7 = arith.addf %3, %6 : vector<2x256xf32>
    %c0_6 = arith.constant 0 : index
    %c0_7 = arith.constant 0 : index
    %8 = vector.load %arg7[%c0_6, %c0_7] : memref<2x256xf32, #tpu.memory_space<vmem>>, vector<2x256xf32>
    tpu.vector_store %arg7[%c0_6, %c0_7], %7 {strides = array<i32>} : memref<2x256xf32, #tpu.memory_space<vmem>>, vector<2x256xf32>,
    %c0_i32_8 = arith.constant 0 : i32
    %9 = arith.cmpi eq, %arg2, %c0_i32_8 : i32
    %10 = arith.extui %9 : i1 to i32
    %c0_i32_9 = arith.constant 0 : i32
    %11 = arith.cmpi ne, %10, %c0_i32_9 : i32
    scf.if %11 {
      %c0_10 = arith.constant 0 : index
      %c0_11 = arith.constant 0 : index
      %12 = vector.load %arg7[%c0_10, %c0_11] : memref<2x256xf32, #tpu.memory_space<vmem>>, vector<2x256xf32>
      %c0_12 = arith.constant 0 : index
      %c0_13 = arith.constant 0 : index
      %13 = vector.load %arg5[%c0_12, %c0_13] : memref<1x256xf32, #tpu.memory_space<vmem>>, vector<1x256xf32>
      %14 = vector.broadcast %13 : vector<1x256xf32> to vector<2x256xf32>
      %15 = arith.addf %12, %14 : vector<2x256xf32>
      %cst_14 = arith.constant 0.000000e+00 : f32
      %16 = vector.broadcast %cst_14 : f32 to vector<2x256xf32>
      %17 = arith.maximumf %15, %16 : vector<2x256xf32>
      %18 = arith.truncf %17 : vector<2x256xf32> to vector<2x256xbf16>
      %c0_15 = arith.constant 0 : index
      %c0_16 = arith.constant 0 : index
      %19 = vector.load %arg6[%c0_15, %c0_16] : memref<2x256xbf16, #tpu.memory_space<vmem>>, vector<2x256xbf16>
      tpu.vector_store %arg6[%c0_15, %c0_16], %18 {strides = array<i32>} : memref<2x256xbf16, #tpu.memory_space<vmem>>, vector<2x256xbf16>,
    } else {
    }
    return
  }
  func.func @transform_0(%arg0: i32, %arg1: i32, %arg2: i32) -> (i32, i32) {
    %c0_i32 = arith.constant 0 : i32
    return %arg0, %arg2 : i32, i32
  }
  func.func @transform_1(%arg0: i32, %arg1: i32, %arg2: i32) -> (i32, i32) {
    %c0_i32 = arith.constant 0 : i32
    return %arg2, %arg1 : i32, i32
  }
  func.func @transform_2(%arg0: i32, %arg1: i32, %arg2: i32) -> (i32, i32) {
    %c0_i32 = arith.constant 0 : i32
    %c0_i32_0 = arith.constant 0 : i32
    return %c0_i32, %arg1 : i32, i32
  }
  func.func @transform_3(%arg0: i32, %arg1: i32, %arg2: i32) -> (i32, i32) {
    %c0_i32 = arith.constant 0 : i32
    return %arg0, %arg1 : i32, i32
  }
}

module attributes {stable_mosaic.version = 11 : i64} {
  func.func @matmul_bias_act_kernel(%arg0: i32, %arg1: i32, %arg2: i32, %arg3: memref<2x512xbf16, #tpu.memory_space<vmem>>, %arg4: memref<512x128xbf16, #tpu.memory_space<vmem>>, %arg5: memref<1x128xf32, #tpu.memory_space<vmem>>, %arg6: memref<2x128xf32, #tpu.memory_space<vmem>>, %arg7: memref<2x128xf32, #tpu.memory_space<vmem>>) attributes {dimension_semantics = [#tpu.dimension_semantics<parallel>, #tpu.dimension_semantics<parallel>, #tpu.dimension_semantics<arbitrary>], iteration_bounds = array<i64: 1, 1, 1>, scalar_prefetch = 0 : i64, scratch_operands = 1 : i64, tpu.core_type = #tpu.core_type<tc>, window_params = [{transform_indices = @transform_0, window_bounds = array<i64: 2, 512>}, {transform_indices = @transform_1, window_bounds = array<i64: 512, 128>}, {transform_indices = @transform_2, window_bounds = array<i64: 1, 128>}, {transform_indices = @transform_3, window_bounds = array<i64: 2, 128>}]} {
    %c0_i32 = arith.constant 0 : i32
    %0 = arith.cmpi eq, %arg2, %c0_i32 : i32
    %1 = arith.extui %0 : i1 to i32
    %c0_i32_0 = arith.constant 0 : i32
    %2 = arith.cmpi ne, %1, %c0_i32_0 : i32
    scf.if %2 {
      %cst_10 = arith.constant 0.000000e+00 : f32
      %12 = vector.broadcast %cst_10 : f32 to vector<2x128xf32>
      %c0_11 = arith.constant 0 : index
      %c0_12 = arith.constant 0 : index
      %13 = vector.load %arg7[%c0_11, %c0_12] : memref<2x128xf32, #tpu.memory_space<vmem>>, vector<2x128xf32>
      tpu.vector_store %arg7[%c0_11, %c0_12], %12 {strides = array<i32>} : memref<2x128xf32, #tpu.memory_space<vmem>>, vector<2x128xf32>,
    } else {
    }
    %c0 = arith.constant 0 : index
    %c0_1 = arith.constant 0 : index
    %3 = vector.load %arg7[%c0, %c0_1] : memref<2x128xf32, #tpu.memory_space<vmem>>, vector<2x128xf32>
    %c0_2 = arith.constant 0 : index
    %c0_3 = arith.constant 0 : index
    %4 = vector.load %arg3[%c0_2, %c0_3] : memref<2x512xbf16, #tpu.memory_space<vmem>>, vector<2x512xbf16>
    %c0_4 = arith.constant 0 : index
    %c0_5 = arith.constant 0 : index
    %5 = vector.load %arg4[%c0_4, %c0_5] : memref<512x128xbf16, #tpu.memory_space<vmem>>, vector<512x128xbf16>
    %cst = arith.constant dense<0.000000e+00> : vector<2x128xf32>
    %6 = tpu.matmul %4, %5, %cst {dimension_numbers = #tpu.dot_dimension_numbers<[1], [0], [0], [1], [0, 0, 1, 1], [], []>} : vector<2x512xbf16>, vector<512x128xbf16>, vector<2x128xf32> -> vector<2x128xf32>
    %7 = arith.addf %3, %6 : vector<2x128xf32>
    %c0_6 = arith.constant 0 : index
    %c0_7 = arith.constant 0 : index
    %8 = vector.load %arg7[%c0_6, %c0_7] : memref<2x128xf32, #tpu.memory_space<vmem>>, vector<2x128xf32>
    tpu.vector_store %arg7[%c0_6, %c0_7], %7 {strides = array<i32>} : memref<2x128xf32, #tpu.memory_space<vmem>>, vector<2x128xf32>,
    %c0_i32_8 = arith.constant 0 : i32
    %9 = arith.cmpi eq, %arg2, %c0_i32_8 : i32
    %10 = arith.extui %9 : i1 to i32
    %c0_i32_9 = arith.constant 0 : i32
    %11 = arith.cmpi ne, %10, %c0_i32_9 : i32
    scf.if %11 {
      %c0_10 = arith.constant 0 : index
      %c0_11 = arith.constant 0 : index
      %12 = vector.load %arg7[%c0_10, %c0_11] : memref<2x128xf32, #tpu.memory_space<vmem>>, vector<2x128xf32>
      %c0_12 = arith.constant 0 : index
      %c0_13 = arith.constant 0 : index
      %13 = vector.load %arg5[%c0_12, %c0_13] : memref<1x128xf32, #tpu.memory_space<vmem>>, vector<1x128xf32>
      %14 = vector.broadcast %13 : vector<1x128xf32> to vector<2x128xf32>
      %15 = arith.addf %12, %14 : vector<2x128xf32>
      %c0_14 = arith.constant 0 : index
      %c0_15 = arith.constant 0 : index
      %16 = vector.load %arg6[%c0_14, %c0_15] : memref<2x128xf32, #tpu.memory_space<vmem>>, vector<2x128xf32>
      tpu.vector_store %arg6[%c0_14, %c0_15], %15 {strides = array<i32>} : memref<2x128xf32, #tpu.memory_space<vmem>>, vector<2x128xf32>,
    } else {
    }
    return
  }
  func.func @transform_0(%arg0: i32, %arg1: i32, %arg2: i32) -> (i32, i32) {
    %c0_i32 = arith.constant 0 : i32
    return %arg0, %arg2 : i32, i32
  }
  func.func @transform_1(%arg0: i32, %arg1: i32, %arg2: i32) -> (i32, i32) {
    %c0_i32 = arith.constant 0 : i32
    return %arg2, %arg1 : i32, i32
  }
  func.func @transform_2(%arg0: i32, %arg1: i32, %arg2: i32) -> (i32, i32) {
    %c0_i32 = arith.constant 0 : i32
    %c0_i32_0 = arith.constant 0 : i32
    return %c0_i32, %arg1 : i32, i32
  }
  func.func @transform_3(%arg0: i32, %arg1: i32, %arg2: i32) -> (i32, i32) {
    %c0_i32 = arith.constant 0 : i32
    return %arg0, %arg1 : i32, i32
  }
}

</mosaic_0001>

<bundles_post_ra>
// kernel: net_forward.5
= control target key start
LH: loop header
LB: loop body
LE: loop exit
PB: predicated region body
PF: predicated region fallthrough
CT: control target
= control target key end

     0   :  { %vm111_vm0 = vcmask 1044480   ;;  %vm112_vm1 = vcmask 1045504   ;;  %vm86_vm2 = vcmask 220160   ;;  %v1223_v1 = vmov 65535   ;;  %s1571_s1 = inlined_call_operand.vmem [shape: bf16[27,16], index: 1, kind: input, shape index: {}]   ;;  %s1572_s0 = inlined_call_operand.vmem [shape: bf16[4,128,27], index: 0, kind: input, shape index: {}]   ;;  %s1573_s2 = inlined_call_operand.vmem [shape: f32[1,16], index: 2, kind: input, shape index: {}]   ;;  %s1574_s3 = inlined_call_operand.vmem [shape: bf16[128,16], index: 3, kind: output, shape index: {}]  }
   0x1   :  { %v1189_v0 = vld [vmem:[%s1571_s1] sm:$0xff]   ;;  %v113_v2 = vsel %vm111_vm0, 4294967295, %v1223_v1  ;;  %v1190_v3 = vld [vmem:[%s1571_s1 + $0x8] sm:$0x3f]   ;;  %v1195_v10 = vld [vmem:[%s1572_s0 + $0x10] sm:$0xff]   ;;  %vm900_vm3 = vcmask 125952  }
   0x2   :  { %1108 = vmatprep.subr.bf16.mxu0 %v1189_v0  ;;  %1128 = vmatprep.subr.bf16.mxu1 %v1189_v0  ;;  %v114_v4 = vsel %vm112_vm1, %v113_v2, 0  ;;  %v1191_v5 = vld [vmem:[%s1572_s0] sm:$0xff]   ;;  %v1193_v8 = vld [vmem:[%s1572_s0 + $0x8] sm:$0xff]   ;;  %v1196_v11 = vld [vmem:[%s1572_s0 + $0x50] sm:$0xff]  }
   0x3   :  { %1109 = vmatpush3.bf16.msra.mxu0 %v1189_v0  ;;  %1129 = vmatpush3.bf16.msra.mxu1 %v1189_v0  ;;  %v116_v6 = vand.u32 %v1190_v3, %v114_v4  ;;  %v1192_v7 = vld [vmem:[%s1572_s0 + $0x40] sm:$0xff]   ;;  %v1194_v9 = vld [vmem:[%s1572_s0 + $0x48] sm:$0xff]   ;;  %v1197_v12 = vld [vmem:[%s1572_s0 + $0x18] sm:$0xff]  }
   0x4   :  { %1112 = vmatprep.mubr.msk.bf16.mxu0 %vm86_vm2, %v1191_v5  ;;  %1132 = vmatprep.mubr.msk.bf16.mxu1 %vm86_vm2, %v1192_v7  ;;  %v1198_v13 = vld [vmem:[%s1572_s0 + $0x58] sm:$0xff]   ;;  %v1199_v14 = vld [vmem:[%s1572_s0 + $0x20] sm:$0xff]   ;;  %v1201_v16 = vld [vmem:[%s1572_s0 + $0x28] sm:$0xff]  }
   0x5   :  { %1110 = vmatprep.subr.bf16.mxu0 %v116_v6  ;;  %1130 = vmatprep.subr.bf16.mxu1 %v116_v6  ;;  %v1200_v15 = vld [vmem:[%s1572_s0 + $0x60] sm:$0xff]   ;;  %v1202_v17 = vld [vmem:[%s1572_s0 + $0x68] sm:$0xff]   ;;  %v1203_v18 = vld [vmem:[%s1572_s0 + $0x30] sm:$0xff]  }
   0x6   :  { %v1204_v19 = vld [vmem:[%s1572_s0 + $0x70] sm:$0xff]   ;;  %v1205_v20 = vld [vmem:[%s1572_s0 + $0x38] sm:$0xff]   ;;  %v1207_v22 = vld [vmem:[%s1572_s0 + $0x80] sm:$0xff]  }
   0x7   :  { %1111 = vmatpush3.bf16.msra.mxu0 %v116_v6  ;;  %1131 = vmatpush3.bf16.msra.mxu1 %v116_v6  ;;  %v1206_v21 = vld [vmem:[%s1572_s0 + $0x78] sm:$0xff]   ;;  %v1208_v23 = vld [vmem:[%s1572_s0 + $0xc0] sm:$0xff]   ;;  %v1209_v24 = vld [vmem:[%s1572_s0 + $0x88] sm:$0xff]  }
   0x8   :  { %1148 = vmatprep.subr.bf16.mxu0 %v1189_v0  ;;  %1168 = vmatprep.subr.bf16.mxu1 %v1189_v0  ;;  %v1210_v25 = vld [vmem:[%s1572_s0 + $0xc8] sm:$0xff]   ;;  %v1211_v26 = vld [vmem:[%s1572_s0 + $0x90] sm:$0xff]   ;;  %v1213_v28 = vld [vmem:[%s1572_s0 + $0x98] sm:$0xff]  }
   0x9   :  { %v1212_v27 = vld [vmem:[%s1572_s0 + $0xd0] sm:$0xff]   ;;  %v1214_v29 = vld [vmem:[%s1572_s0 + $0xd8] sm:$0xff]   ;;  %v1215_v30 = vld [vmem:[%s1572_s0 + $0xa0] sm:$0xff]  }
   0xa   :  { %1113 = vmatmul.mubr.msk.bf16.vlgmr.msra.gmra.mrb[0].mxu0 %vm86_vm2, %v1193_v8  ;;  %1133 = vmatmul.mubr.msk.bf16.vlgmr.msra.gmra.mrb[0].mxu1 %vm86_vm2, %v1194_v9  ;;  %v1216_v31 = vld [vmem:[%s1572_s0 + $0xe0] sm:$0xff]   ;;  %v1217_v32 = vld [vmem:[%s1572_s0 + $0xa8] sm:$0xff]   ;;  %v1219_v34 = vld [vmem:[%s1572_s0 + $0xb0] sm:$0xff]  }
   0xb   :  { %1149 = vmatpush3.bf16.msra.mxu0 %v1189_v0  ;;  %1169 = vmatpush3.bf16.msra.mxu1 %v1189_v0  ;;  %v1218_v33 = vld [vmem:[%s1572_s0 + $0xe8] sm:$0xff]   ;;  %v1220_v35 = vld [vmem:[%s1572_s0 + $0xf0] sm:$0xff]   ;;  %v1221_v36 = vld [vmem:[%s1572_s0 + $0xb8] sm:$0xff]  }
   0xc   :  { %1116 = vmatprep.mubr.msk.bf16.mxu0 %vm86_vm2, %v1195_v10  ;;  %1136 = vmatprep.mubr.msk.bf16.mxu1 %vm86_vm2, %v1196_v11  ;;  %v1222_v37 = vld [vmem:[%s1572_s0 + $0xf8] sm:$0xff]  }
   0xd   :  { %1150 = vmatprep.subr.bf16.mxu0 %v116_v6  ;;  %1170 = vmatprep.subr.bf16.mxu1 %v116_v6 }
   0xf   :  { %1151 = vmatpush3.bf16.msra.mxu0 %v116_v6  ;;  %1171 = vmatpush3.bf16.msra.mxu1 %v116_v6 }
  0x12   :  { %1117 = vmatmul.mubr.msk.bf16.gmra.mrb[4].mxu0 %vm86_vm2, %v1197_v12  ;;  %1137 = vmatmul.mubr.msk.bf16.gmra.mrb[4].mxu1 %vm86_vm2, %v1198_v13 }
  0x13   :  { %1120 = vmatprep.mubr.msk.bf16.mxu0 %vm86_vm2, %v1199_v14  ;;  %1140 = vmatprep.mubr.msk.bf16.mxu1 %vm86_vm2, %v1200_v15 }
  0x1a   :  { %1121 = vmatmul.mubr.msk.bf16.gmra.mrb[8].mxu0 %vm86_vm2, %v1201_v16  ;;  %1141 = vmatmul.mubr.msk.bf16.gmra.mrb[8].mxu1 %vm86_vm2, %v1202_v17 }
  0x1b   :  { %1124 = vmatprep.mubr.msk.bf16.mxu0 %vm86_vm2, %v1203_v18  ;;  %1144 = vmatprep.mubr.msk.bf16.mxu1 %vm86_vm2, %v1204_v19 }
  0x22   :  { %1125 = vmatmul.mubr.msk.bf16.gmra.mrb[12].mxu0 %vm86_vm2, %v1205_v20  ;;  %1145 = vmatmul.mubr.msk.bf16.gmra.mrb[12].mxu1 %vm86_vm2, %v1206_v21 }
  0x23   :  { %1152 = vmatprep.mubr.msk.bf16.mxu0 %vm86_vm2, %v1207_v22  ;;  %1172 = vmatprep.mubr.msk.bf16.mxu1 %vm86_vm2, %v1208_v23 }
  0x2a   :  { %1153 = vmatmul.mubr.msk.bf16.vlgmr.msra.gmra.mrb[16].mxu0 %vm86_vm2, %v1209_v24  ;;  %1173 = vmatmul.mubr.msk.bf16.vlgmr.msra.gmra.mrb[16].mxu1 %vm86_vm2, %v1210_v25 }
  0x2b   :  { %1156 = vmatprep.mubr.msk.bf16.mxu0 %vm86_vm2, %v1211_v26  ;;  %1176 = vmatprep.mubr.msk.bf16.mxu1 %vm86_vm2, %v1212_v27  ;;  %v1453_v27 = vld [vmem:[%s1573_s2] ss:$0 sm:$0xff] }
  0x32   :  { %1157 = vmatmul.mubr.msk.bf16.gmra.mrb[20].mxu0 %vm86_vm2, %v1213_v28  ;;  %1177 = vmatmul.mubr.msk.bf16.gmra.mrb[20].mxu1 %vm86_vm2, %v1214_v29 }
  0x33   :  { %1160 = vmatprep.mubr.msk.bf16.mxu0 %vm86_vm2, %v1215_v30  ;;  %1180 = vmatprep.mubr.msk.bf16.mxu1 %vm86_vm2, %v1216_v31 }
  0x3a   :  { %1161 = vmatmul.mubr.msk.bf16.gmra.mrb[24].mxu0 %vm86_vm2, %v1217_v32  ;;  %1181 = vmatmul.mubr.msk.bf16.gmra.mrb[24].mxu1 %vm86_vm2, %v1218_v33 }
  0x3b   :  { %1164 = vmatprep.mubr.msk.bf16.mxu0 %vm86_vm2, %v1219_v34  ;;  %1184 = vmatprep.mubr.msk.bf16.mxu1 %vm86_vm2, %v1220_v35 }
  0x42   :  { %1165 = vmatmul.mubr.msk.bf16.gmra.mrb[28].mxu0 %vm86_vm2, %v1221_v36  ;;  %1185 = vmatmul.mubr.msk.bf16.gmra.mrb[28].mxu1 %vm86_vm2, %v1222_v37 }
  0xdd   :  { %v1114_v38 = vpop.f32.mrb[0].mxu0  ;;  %v1134_v39 = vpop.f32.mrb[0].mxu1 }
  0xde   :  { %v395_v40 = vmax.f32 %v1114_v38, %v1134_v39  ;;  %v152_v41 = vpop.f32.mrb[1].mxu0  ;;  %v330_v42 = vpop.f32.mrb[1].mxu1 }
  0xdf   :  { %v393_v43 = vmax.f32 %v152_v41, %v330_v42  ;;  %v1115_v44 = vpop.f32.mrb[2].mxu0  ;;  %v1135_v45 = vpop.f32.mrb[2].mxu1 }
  0xe0   :  { %v396_v46 = vmax.f32 %v1115_v44, %v1135_v45  ;;  %v155_v47 = vpop.f32.mrb[3].mxu0  ;;  %v333_v48 = vpop.f32.mrb[3].mxu1 }
  0xe1   :  { %v394_v49 = vmax.f32 %v155_v47, %v333_v48 }
  0xe5   :  { %v1378_v50 = vpop.f32.mrb[4].mxu0  ;;  %v1380_v51 = vpop.f32.mrb[4].mxu1 }
  0xe6   :  { %v399_v52 = vmax.f32 %v1378_v50, %v1380_v51  ;;  %v1384_v53 = vpop.f32.mrb[5].mxu0  ;;  %v1386_v54 = vpop.f32.mrb[5].mxu1 }
  0xe7   :  { %v397_v55 = vmax.f32 %v1384_v53, %v1386_v54  ;;  %v1390_v56 = vpop.f32.mrb[6].mxu0  ;;  %v1392_v57 = vpop.f32.mrb[6].mxu1 }
  0xe8   :  { %v400_v58 = vmax.f32 %v1390_v56, %v1392_v57  ;;  %v1396_v59 = vpop.f32.mrb[7].mxu0  ;;  %v1398_v60 = vpop.f32.mrb[7].mxu1 }
  0xe9   :  { %v398_v61 = vmax.f32 %v1396_v59, %v1398_v60 }
  0xed   :  { %v1402_v62 = vpop.f32.mrb[8].mxu0  ;;  %v1404_v63 = vpop.f32.mrb[8].mxu1 }
  0xee   :  { %v403_v0 = vmax.f32 %v1402_v62, %v1404_v63  ;;  %v1408_v1 = vpop.f32.mrb[9].mxu0  ;;  %v1410_v2 = vpop.f32.mrb[9].mxu1 }
  0xef   :  { %v401_v3 = vmax.f32 %v1408_v1, %v1410_v2  ;;  %v1414_v4 = vpop.f32.mrb[10].mxu0  ;;  %v1416_v5 = vpop.f32.mrb[10].mxu1 }
  0xf0   :  { %v404_v6 = vmax.f32 %v1414_v4, %v1416_v5  ;;  %v1420_v7 = vpop.f32.mrb[11].mxu0  ;;  %v1422_v8 = vpop.f32.mrb[11].mxu1 }
  0xf1   :  { %v402_v9 = vmax.f32 %v1420_v7, %v1422_v8 }
  0xf5   :  { %v1426_v10 = vpop.f32.mrb[12].mxu0  ;;  %v1428_v11 = vpop.f32.mrb[12].mxu1 }
  0xf6   :  { %v407_v12 = vmax.f32 %v1426_v10, %v1428_v11  ;;  %v1432_v13 = vpop.f32.mrb[13].mxu0  ;;  %v1434_v14 = vpop.f32.mrb[13].mxu1 }
  0xf7   :  { %v405_v15 = vmax.f32 %v1432_v13, %v1434_v14  ;;  %v1438_v16 = vpop.f32.mrb[14].mxu0  ;;  %v1440_v17 = vpop.f32.mrb[14].mxu1 }
  0xf8   :  { %v408_v18 = vmax.f32 %v1438_v16, %v1440_v17  ;;  %v1444_v19 = vpop.f32.mrb[15].mxu0  ;;  %v1446_v20 = vpop.f32.mrb[15].mxu1 }
  0xf9   :  { %v406_v21 = vmax.f32 %v1444_v19, %v1446_v20 }
  0xfd   :  { %v1154_v22 = vpop.f32.mrb[16].mxu0  ;;  %v1174_v23 = vpop.f32.mrb[16].mxu1 }
  0xfe   :  { %v589_v24 = vmax.f32 %v395_v40, %v1154_v22  ;;  %v524_v25 = vpop.f32.mrb[17].mxu0  ;;  %v718_v26 = vpop.f32.mrb[17].mxu1 }
  0xff   :  { %v587_v28 = vmax.f32 %v393_v43, %v524_v25  ;;  %v1155_v29 = vpop.f32.mrb[18].mxu0  ;;  %v1175_v30 = vpop.f32.mrb[18].mxu1 }
 0x100   :  { %v783_v31 = vmax.f32 %v589_v24, %v1174_v23  ;;  %v590_v32 = vmax.f32 %v396_v46, %v1155_v29  ;;  %v527_v33 = vpop.f32.mrb[19].mxu0  ;;  %v721_v34 = vpop.f32.mrb[19].mxu1 }
 0x101   :  { %v781_v35 = vmax.f32 %v587_v28, %v718_v26  ;;  %v588_v36 = vmax.f32 %v394_v49, %v527_v33 }
 0x102   :  { %v806_v37 = vadd.f32 %v1453_v27, %v783_v31  ;;  %v784_v38 = vmax.f32 %v590_v32, %v1175_v30 }
 0x103   :  { %v804_v39 = vadd.f32 %v1453_v27, %v781_v35  ;;  %v782_v40 = vmax.f32 %v588_v36, %v721_v34 }
 0x104   :  { %v822_v41 = vmax.f32 %v806_v37, 0.0  ;;  %v807_v42 = vadd.f32 %v1453_v27, %v784_v38 }
 0x105   :  { %v820_v44 = vmax.f32 %v804_v39, 0.0  ;;  %v805_v43 = vadd.f32 %v1453_v27, %v782_v40  ;;  %v1158_v45 = vpop.f32.mrb[20].mxu0  ;;  %v1178_v47 = vpop.f32.mrb[20].mxu1 }
 0x106   :  { %v1054_v46 = vpack.c.bf16 %v822_v41, %v822_v41  ;;  %v823_v48 = vmax.f32 %v807_v42, 0.0  ;;  %v593_v49 = vmax.f32 %v399_v52, %v1158_v45  ;;  %v540_v22 = vpop.f32.mrb[21].mxu0  ;;  %v734_v23 = vpop.f32.mrb[21].mxu1 }
 0x107   :  { %v1052_v24 = vpack.c.bf16 %v820_v44, %v820_v44  ;;  %v821_v25 = vmax.f32 %v805_v43, 0.0  ;;  %v591_v26 = vmax.f32 %v397_v55, %v540_v22  ;;  %v1159_v28 = vpop.f32.mrb[22].mxu0  ;;  %v1179_v29 = vpop.f32.mrb[22].mxu1 }
 0x108   :  { %903 = vst.msk [vmem:[%s1574_s3 + $0x8] sm:$0xf] %vm900_vm3, %v1054_v46  ;;  %v1055_v30 = vpack.c.bf16 %v823_v48, %v823_v48  ;;  %v787_v31 = vmax.f32 %v593_v49, %v1178_v47  ;;  %v594_v50 = vmax.f32 %v400_v58, %v1159_v28  ;;  %v543_v51 = vpop.f32.mrb[23].mxu0  ;;  %v737_v52 = vpop.f32.mrb[23].mxu1 }
 0x109   :  { %901 = vst.msk [vmem:[%s1574_s3] sm:$0xf] %vm900_vm3, %v1052_v24  ;;  %v1053_v53 = vpack.c.bf16 %v821_v25, %v821_v25  ;;  %v785_v54 = vmax.f32 %v591_v26, %v734_v23  ;;  %v592_v55 = vmax.f32 %v398_v61, %v543_v51 }
 0x10a   :  { %904 = vst.msk [vmem:[%s1574_s3 + $0xc] sm:$0xf] %vm900_vm3, %v1055_v30  ;;  %v810_v56 = vadd.f32 %v1453_v27, %v787_v31  ;;  %v788_v57 = vmax.f32 %v594_v50, %v1179_v29 }
 0x10b   :  { %902 = vst.msk [vmem:[%s1574_s3 + $0x4] sm:$0xf] %vm900_vm3, %v1053_v53  ;;  %v808_v58 = vadd.f32 %v1453_v27, %v785_v54  ;;  %v786_v32 = vmax.f32 %v592_v55, %v737_v52 }
 0x10c   :  { %v826_v33 = vmax.f32 %v810_v56, 0.0  ;;  %v811_v59 = vadd.f32 %v1453_v27, %v788_v57 }
 0x10d   :  { %v824_v60 = vmax.f32 %v808_v58, 0.0  ;;  %v809_v61 = vadd.f32 %v1453_v27, %v786_v32  ;;  %v1162_v34 = vpop.f32.mrb[24].mxu0  ;;  %v1182_v35 = vpop.f32.mrb[24].mxu1 }
 0x10e   :  { %v1058_v36 = vpack.c.bf16 %v826_v33, %v826_v33  ;;  %v827_v37 = vmax.f32 %v811_v59, 0.0  ;;  %v597_v38 = vmax.f32 %v403_v0, %v1162_v34  ;;  %v556_v39 = vpop.f32.mrb[25].mxu0  ;;  %v750_v40 = vpop.f32.mrb[25].mxu1 }
 0x10f   :  { %v1056_v41 = vpack.c.bf16 %v824_v60, %v824_v60  ;;  %v825_v42 = vmax.f32 %v809_v61, 0.0  ;;  %v595_v44 = vmax.f32 %v401_v3, %v556_v39  ;;  %v1163_v43 = vpop.f32.mrb[26].mxu0  ;;  %v1183_v45 = vpop.f32.mrb[26].mxu1 }
 0x110   :  { %907 = vst.msk [vmem:[%s1574_s3 + $0x18] sm:$0xf] %vm900_vm3, %v1058_v36  ;;  %v1059_v47 = vpack.c.bf16 %v827_v37, %v827_v37  ;;  %v791_v46 = vmax.f32 %v597_v38, %v1182_v35  ;;  %v598_v62 = vmax.f32 %v404_v6, %v1163_v43  ;;  %v559_v63 = vpop.f32.mrb[27].mxu0  ;;  %v753_v0 = vpop.f32.mrb[27].mxu1 }
 0x111   :  { %905 = vst.msk [vmem:[%s1574_s3 + $0x10] sm:$0xf] %vm900_vm3, %v1056_v41  ;;  %v1057_v1 = vpack.c.bf16 %v825_v42, %v825_v42  ;;  %v789_v2 = vmax.f32 %v595_v44, %v750_v40  ;;  %v596_v3 = vmax.f32 %v402_v9, %v559_v63 }
 0x112   :  { %908 = vst.msk [vmem:[%s1574_s3 + $0x1c] sm:$0xf] %vm900_vm3, %v1059_v47  ;;  %v814_v4 = vadd.f32 %v1453_v27, %v791_v46  ;;  %v792_v5 = vmax.f32 %v598_v62, %v1183_v45 }
 0x113   :  { %906 = vst.msk [vmem:[%s1574_s3 + $0x14] sm:$0xf] %vm900_vm3, %v1057_v1  ;;  %v812_v6 = vadd.f32 %v1453_v27, %v789_v2  ;;  %v790_v48 = vmax.f32 %v596_v3, %v753_v0 }
 0x114   :  { %v830_v49 = vmax.f32 %v814_v4, 0.0  ;;  %v815_v7 = vadd.f32 %v1453_v27, %v792_v5 }
 0x115   :  { %v828_v8 = vmax.f32 %v812_v6, 0.0  ;;  %v813_v9 = vadd.f32 %v1453_v27, %v790_v48  ;;  %v1166_v22 = vpop.f32.mrb[28].mxu0  ;;  %v1186_v23 = vpop.f32.mrb[28].mxu1 }
 0x116   :  { %v1062_v24 = vpack.c.bf16 %v830_v49, %v830_v49  ;;  %v831_v25 = vmax.f32 %v815_v7, 0.0  ;;  %v601_v26 = vmax.f32 %v407_v12, %v1166_v22  ;;  %v572_v28 = vpop.f32.mrb[29].mxu0  ;;  %v766_v29 = vpop.f32.mrb[29].mxu1 }
 0x117   :  { %v1060_v30 = vpack.c.bf16 %v828_v8, %v828_v8  ;;  %v829_v31 = vmax.f32 %v813_v9, 0.0  ;;  %v599_v50 = vmax.f32 %v405_v15, %v572_v28  ;;  %v1167_v51 = vpop.f32.mrb[30].mxu0  ;;  %v1187_v52 = vpop.f32.mrb[30].mxu1 }
 0x118   :  { %911 = vst.msk [vmem:[%s1574_s3 + $0x28] sm:$0xf] %vm900_vm3, %v1062_v24  ;;  %v1063_v53 = vpack.c.bf16 %v831_v25, %v831_v25  ;;  %v795_v54 = vmax.f32 %v601_v26, %v1186_v23  ;;  %v602_v10 = vmax.f32 %v408_v18, %v1167_v51  ;;  %v575_v11 = vpop.f32.mrb[31].mxu0  ;;  %v769_v12 = vpop.f32.mrb[31].mxu1 }
 0x119   :  { %909 = vst.msk [vmem:[%s1574_s3 + $0x20] sm:$0xf] %vm900_vm3, %v1060_v30  ;;  %v1061_v13 = vpack.c.bf16 %v829_v31, %v829_v31  ;;  %v793_v14 = vmax.f32 %v599_v50, %v766_v29  ;;  %v600_v15 = vmax.f32 %v406_v21, %v575_v11 }
 0x11a   :  { %912 = vst.msk [vmem:[%s1574_s3 + $0x2c] sm:$0xf] %vm900_vm3, %v1063_v53  ;;  %v818_v16 = vadd.f32 %v1453_v27, %v795_v54  ;;  %v796_v17 = vmax.f32 %v602_v10, %v1187_v52 }
 0x11b   :  { %910 = vst.msk [vmem:[%s1574_s3 + $0x24] sm:$0xf] %vm900_vm3, %v1061_v13  ;;  %v816_v18 = vadd.f32 %v1453_v27, %v793_v14  ;;  %v794_v55 = vmax.f32 %v600_v15, %v769_v12 }
 0x11c   :  { %v834_v56 = vmax.f32 %v818_v16, 0.0  ;;  %v819_v19 = vadd.f32 %v1453_v27, %v796_v17 }
 0x11d   :  { %v832_v20 = vmax.f32 %v816_v18, 0.0  ;;  %v817_v21 = vadd.f32 %v1453_v27, %v794_v55 }
 0x11e   :  { %v1066_v57 = vpack.c.bf16 %v834_v56, %v834_v56  ;;  %v835_v58 = vmax.f32 %v819_v19, 0.0 }
 0x11f   :  { %v1064_v32 = vpack.c.bf16 %v832_v20, %v832_v20  ;;  %v833_v33 = vmax.f32 %v817_v21, 0.0 }
 0x120   :  { %915 = vst.msk [vmem:[%s1574_s3 + $0x38] sm:$0xf] %vm900_vm3, %v1066_v57  ;;  %v1067_v59 = vpack.c.bf16 %v835_v58, %v835_v58 }
 0x121   :  { %913 = vst.msk [vmem:[%s1574_s3 + $0x30] sm:$0xf] %vm900_vm3, %v1064_v32  ;;  %v1065_v60 = vpack.c.bf16 %v833_v33, %v833_v33 }
 0x122   :  { %916 = vst.msk [vmem:[%s1574_s3 + $0x3c] sm:$0xf] %vm900_vm3, %v1067_v59 }
 0x123   :  { %914 = vst.msk [vmem:[%s1574_s3 + $0x34] sm:$0xf] %vm900_vm3, %v1065_v60 }

// kernel: net_forward.6
= control target key start
LH: loop header
LB: loop body
LE: loop exit
PB: predicated region body
PF: predicated region fallthrough
CT: control target
= control target key end

     0   :  { %v539_v0 = vmov 0   ;;  %vm109_vm0 = vcmask 130048   ;;  %vm442_vm1 = vcmask 257024   ;;  %s710_s1 = inlined_call_operand.vmem [shape: bf16[144,32], index: 1, kind: input, shape index: {}]   ;;  %s711_s0 = inlined_call_operand.vmem [shape: bf16[4,32,144], index: 0, kind: input, shape index: {}]   ;;  %s712_s2 = inlined_call_operand.vmem [shape: f32[1,32], index: 2, kind: input, shape index: {}]   ;;  %s713_s3 = inlined_call_operand.vmem [shape: bf16[32,32], index: 3, kind: output, shape index: {}]  }
   0x1   :  { %116 = vmatprep.subr.bf16.mxu0 %v539_v0  ;;  %194 = vmatprep.subr.bf16.mxu1 %v539_v0  ;;  %v506_v1 = vld [vmem:[%s710_s1] sm:$0xff]   ;;  %v507_v2 = vld [vmem:[%s710_s1 + $0x8] sm:$0xff]   ;;  %v573_v3 = vld [vmem:[%s710_s1 + $0x10] sm:$0xff]  }
   0x2   :  { %117 = vmatpush1.bf16.msra.mxu0 %v506_v1  ;;  %195 = vmatpush1.bf16.msra.mxu1 %v506_v1  ;;  %v580_v4 = vld [vmem:[%s710_s1 + $0x18] sm:$0xff]   ;;  %v517_v5 = vld [vmem:[%s711_s0 + $0x4] ss:$8 sps:$4 sm:$0xff]   ;;  %v512_v9 = vld [vmem:[%s710_s1 + $0x30] sm:$0xff]  }
   0x3   :  { %118 = vmatprep.subr.bf16.mxu0 %v539_v0  ;;  %196 = vmatprep.subr.bf16.mxu1 %v539_v0  ;;  %v520_v6 = vld [vmem:[%s711_s0 + $0x24] ss:$8 sps:$4 sm:$0xff]   ;;  %v513_v10 = vld [vmem:[%s710_s1 + $0x38] sm:$0xff]   ;;  %v515_v12 = vld [vmem:[%s711_s0] ss:$8 sps:$4 sm:$0xff]  }
   0x4   :  { %464 = vmatprep.mubr.msk.bf16.mxu0 %vm109_vm0, %v517_v5  ;;  %474 = vmatprep.mubr.msk.bf16.mxu1 %vm109_vm0, %v520_v6  ;;  %v510_v7 = vld [vmem:[%s710_s1 + $0x20] sm:$0xff]   ;;  %v511_v8 = vld [vmem:[%s710_s1 + $0x28] sm:$0xff]   ;;  %v521_v14 = vld [vmem:[%s711_s0 + $0x14] ss:$8 sps:$4 sm:$0xff]  }
   0x5   :  { %v514_v11 = vld [vmem:[%s710_s1 + $0x40] sm:$0xff]   ;;  %v524_v15 = vld [vmem:[%s711_s0 + $0x34] ss:$8 sps:$4 sm:$0xff]   ;;  %v523_v16 = vld [vmem:[%s711_s0 + $0x10] ss:$8 sps:$4 sm:$0xff]  }
   0x6   :  { %119 = vmatpush1.bf16.msra.mxu0 %v507_v2  ;;  %197 = vmatpush1.bf16.msra.mxu1 %v507_v2  ;;  %v518_v13 = vld [vmem:[%s711_s0 + $0x20] ss:$8 sps:$4 sm:$0xff]   ;;  %v526_v17 = vld [vmem:[%s711_s0 + $0x30] ss:$8 sps:$4 sm:$0xff]   ;;  %v529_v18 = vld [vmem:[%s711_s0 + $0x44] ss:$8 sps:$4 sm:$0xff]  }
   0x7   :  { %120 = vmatprep.subr.bf16.mxu0 %v539_v0  ;;  %198 = vmatprep.subr.bf16.mxu1 %v539_v0  ;;  %v532_v19 = vld [vmem:[%s711_s0 + $0x64] ss:$8 sps:$4 sm:$0xff]   ;;  %v527_v20 = vld [vmem:[%s711_s0 + $0x40] ss:$8 sps:$4 sm:$0xff]   ;;  %v533_v22 = vld [vmem:[%s711_s0 + $0x54] ss:$8 sps:$4 sm:$0xff]  }
   0x8   :  { %v530_v21 = vld [vmem:[%s711_s0 + $0x60] ss:$8 sps:$4 sm:$0xff]   ;;  %v535_v23 = vld [vmem:[%s711_s0 + $0x74] ss:$8 sps:$4 sm:$0xff]   ;;  %v537_v24 = vld [vmem:[%s711_s0 + $0x50] ss:$8 sps:$4 sm:$0xff]  }
   0x9   :  { %v538_v25 = vld [vmem:[%s711_s0 + $0x70] ss:$8 sps:$4 sm:$0xff]   ;;  %v496_v51 = vld [vmem:[%s712_s2] ss:$0 sm:$0xff] }
   0xa   :  { %121 = vmatpush1.bf16.msra.mxu0 %v573_v3  ;;  %199 = vmatpush1.bf16.msra.mxu1 %v573_v3 }
   0xb   :  { %122 = vmatprep.subr.bf16.mxu0 %v539_v0  ;;  %200 = vmatprep.subr.bf16.mxu1 %v539_v0 }
   0xe   :  { %123 = vmatpush1.bf16.msra.mxu0 %v580_v4  ;;  %201 = vmatpush1.bf16.msra.mxu1 %v580_v4 }
   0xf   :  { %124 = vmatprep.subr.bf16.mxu0 %v539_v0  ;;  %202 = vmatprep.subr.bf16.mxu1 %v539_v0 }
  0x12   :  { %125 = vmatpush1.bf16.msra.mxu0 %v510_v7  ;;  %203 = vmatpush1.bf16.msra.mxu1 %v510_v7 }
  0x13   :  { %126 = vmatprep.subr.bf16.mxu0 %v539_v0  ;;  %204 = vmatprep.subr.bf16.mxu1 %v539_v0 }
  0x16   :  { %127 = vmatpush1.bf16.msra.mxu0 %v511_v8  ;;  %205 = vmatpush1.bf16.msra.mxu1 %v511_v8 }
  0x17   :  { %128 = vmatprep.subr.bf16.mxu0 %v539_v0  ;;  %206 = vmatprep.subr.bf16.mxu1 %v539_v0 }
  0x1a   :  { %129 = vmatpush1.bf16.msra.mxu0 %v512_v9  ;;  %207 = vmatpush1.bf16.msra.mxu1 %v512_v9 }
  0x1b   :  { %130 = vmatprep.subr.bf16.mxu0 %v539_v0  ;;  %208 = vmatprep.subr.bf16.mxu1 %v539_v0 }
  0x1e   :  { %131 = vmatpush1.bf16.msra.mxu0 %v513_v10  ;;  %209 = vmatpush1.bf16.msra.mxu1 %v513_v10 }
  0x1f   :  { %132 = vmatprep.subr.bf16.mxu0 %v539_v0  ;;  %210 = vmatprep.subr.bf16.mxu1 %v539_v0 }
  0x22   :  { %133 = vmatpush1.bf16.msra.mxu0 %v514_v11  ;;  %211 = vmatpush1.bf16.msra.mxu1 %v514_v11 }
  0x23   :  { %276 = vmatprep.subr.bf16.mxu0 %v539_v0  ;;  %358 = vmatprep.subr.bf16.mxu1 %v539_v0 }
  0x25   :  { %149 = vmatmul.mubr.bf16.vlgmr.msra.gmra.mrb[0].mxu0 %v515_v12  ;;  %227 = vmatmul.mubr.bf16.vlgmr.msra.gmra.mrb[0].mxu1 %v518_v13 }
  0x26   :  { %277 = vmatpush1.bf16.msra.mxu0 %v506_v1  ;;  %359 = vmatpush1.bf16.msra.mxu1 %v506_v1 }
  0x27   :  { %278 = vmatprep.subr.bf16.mxu0 %v539_v0  ;;  %360 = vmatprep.subr.bf16.mxu1 %v539_v0 }
  0x28   :  { %465 = vmatprep.mubr.msk.bf16.mxu0 %vm109_vm0, %v521_v14  ;;  %475 = vmatprep.mubr.msk.bf16.mxu1 %vm109_vm0, %v524_v15 }
  0x2a   :  { %279 = vmatpush1.bf16.msra.mxu0 %v507_v2  ;;  %361 = vmatpush1.bf16.msra.mxu1 %v507_v2 }
  0x2b   :  { %280 = vmatprep.subr.bf16.mxu0 %v539_v0  ;;  %362 = vmatprep.subr.bf16.mxu1 %v539_v0 }
  0x2d   :  { %157 = vmatmul.mubr.bf16.gmra.mrb[4].mxu0 %v523_v16  ;;  %235 = vmatmul.mubr.bf16.gmra.mrb[4].mxu1 %v526_v17 }
  0x2e   :  { %281 = vmatpush1.bf16.msra.mxu0 %v573_v3  ;;  %363 = vmatpush1.bf16.msra.mxu1 %v573_v3 }
  0x2f   :  { %282 = vmatprep.subr.bf16.mxu0 %v539_v0  ;;  %364 = vmatprep.subr.bf16.mxu1 %v539_v0 }
  0x30   :  { %484 = vmatprep.mubr.msk.bf16.mxu0 %vm109_vm0, %v529_v18  ;;  %494 = vmatprep.mubr.msk.bf16.mxu1 %vm109_vm0, %v532_v19 }
  0x32   :  { %283 = vmatpush1.bf16.msra.mxu0 %v580_v4  ;;  %365 = vmatpush1.bf16.msra.mxu1 %v580_v4 }
  0x33   :  { %284 = vmatprep.subr.bf16.mxu0 %v539_v0  ;;  %366 = vmatprep.subr.bf16.mxu1 %v539_v0 }
  0x36   :  { %285 = vmatpush1.bf16.msra.mxu0 %v510_v7  ;;  %367 = vmatpush1.bf16.msra.mxu1 %v510_v7 }
  0x37   :  { %286 = vmatprep.subr.bf16.mxu0 %v539_v0  ;;  %368 = vmatprep.subr.bf16.mxu1 %v539_v0 }
  0x3a   :  { %287 = vmatpush1.bf16.msra.mxu0 %v511_v8  ;;  %369 = vmatpush1.bf16.msra.mxu1 %v511_v8 }
  0x3b   :  { %288 = vmatprep.subr.bf16.mxu0 %v539_v0  ;;  %370 = vmatprep.subr.bf16.mxu1 %v539_v0 }
  0x3e   :  { %289 = vmatpush1.bf16.msra.mxu0 %v512_v9  ;;  %371 = vmatpush1.bf16.msra.mxu1 %v512_v9 }
  0x3f   :  { %290 = vmatprep.subr.bf16.mxu0 %v539_v0  ;;  %372 = vmatprep.subr.bf16.mxu1 %v539_v0 }
  0x42   :  { %291 = vmatpush1.bf16.msra.mxu0 %v513_v10  ;;  %373 = vmatpush1.bf16.msra.mxu1 %v513_v10 }
  0x43   :  { %292 = vmatprep.subr.bf16.mxu0 %v539_v0  ;;  %374 = vmatprep.subr.bf16.mxu1 %v539_v0 }
  0x46   :  { %293 = vmatpush1.bf16.msra.mxu0 %v514_v11  ;;  %375 = vmatpush1.bf16.msra.mxu1 %v514_v11 }
  0x49   :  { %309 = vmatmul.mubr.bf16.vlgmr.msra.gmra.mrb[8].mxu0 %v527_v20  ;;  %391 = vmatmul.mubr.bf16.vlgmr.msra.gmra.mrb[8].mxu1 %v530_v21 }
  0x4a   :  { %485 = vmatprep.mubr.msk.bf16.mxu0 %vm109_vm0, %v533_v22  ;;  %495 = vmatprep.mubr.msk.bf16.mxu1 %vm109_vm0, %v535_v23 }
  0x51   :  { %317 = vmatmul.mubr.bf16.gmra.mrb[12].mxu0 %v537_v24  ;;  %399 = vmatmul.mubr.bf16.gmra.mrb[12].mxu1 %v538_v25 }
  0xf8   :  { %v150_v26 = vpop.f32.mrb[0].mxu0  ;;  %v228_v27 = vpop.f32.mrb[0].mxu1 }
  0xf9   :  { %v243_v28 = vmax.f32 %v150_v26, %v228_v27  ;;  %v152_v29 = vpop.f32.mrb[1].mxu0  ;;  %v230_v30 = vpop.f32.mrb[1].mxu1 }
  0xfa   :  { %v153_v31 = vpop.f32.mrb[2].mxu0  ;;  %v231_v32 = vpop.f32.mrb[2].mxu1 }
  0xfb   :  { %v244_v33 = vmax.f32 %v153_v31, %v231_v32  ;;  %v155_v34 = vpop.f32.mrb[3].mxu0  ;;  %v233_v35 = vpop.f32.mrb[3].mxu1 }
 0x100   :  { %v158_v36 = vpop.f32.mrb[4].mxu0  ;;  %v236_v37 = vpop.f32.mrb[4].mxu1 }
 0x101   :  { %v160_v38 = vpop.f32.mrb[5].mxu0  ;;  %v245_v39 = vmax.f32 %v158_v36, %v236_v37  ;;  %v238_v40 = vpop.f32.mrb[5].mxu1 }
 0x102   :  { %v161_v41 = vpop.f32.mrb[6].mxu0  ;;  %v239_v42 = vpop.f32.mrb[6].mxu1 }
 0x103   :  { %v163_v43 = vpop.f32.mrb[7].mxu0  ;;  %v246_v44 = vmax.f32 %v161_v41, %v239_v42  ;;  %v241_v45 = vpop.f32.mrb[7].mxu1 }
 0x11c   :  { %v310_v46 = vpop.f32.mrb[8].mxu0  ;;  %v392_v47 = vpop.f32.mrb[8].mxu1 }
 0x11d   :  { %v325_v48 = vmax.f32 %v243_v28, %v310_v46  ;;  %v312_v49 = vpop.f32.mrb[9].mxu0  ;;  %v394_v50 = vpop.f32.mrb[9].mxu1 }
 0x11e   :  { %v313_v52 = vpop.f32.mrb[10].mxu0  ;;  %v395_v53 = vpop.f32.mrb[10].mxu1 }
 0x11f   :  { %v407_v54 = vmax.f32 %v325_v48, %v392_v47  ;;  %v326_v55 = vmax.f32 %v244_v33, %v313_v52  ;;  %v315_v56 = vpop.f32.mrb[11].mxu0  ;;  %v397_v57 = vpop.f32.mrb[11].mxu1 }
 0x121   :  { %v418_v58 = vadd.f32 %v496_v51, %v407_v54  ;;  %v408_v59 = vmax.f32 %v326_v55, %v395_v53 }
 0x123   :  { %v422_v60 = vmax.f32 %v418_v58, 0.0  ;;  %v419_v61 = vadd.f32 %v496_v51, %v408_v59 }
 0x124   :  { %v318_v62 = vpop.f32.mrb[12].mxu0  ;;  %v400_v63 = vpop.f32.mrb[12].mxu1 }
 0x125   :  { %v501_v0 = vpack.c.bf16 %v422_v60, %v422_v60  ;;  %v423_v1 = vmax.f32 %v419_v61, 0.0  ;;  %v327_v2 = vmax.f32 %v245_v39, %v318_v62  ;;  %v320_v3 = vpop.f32.mrb[13].mxu0  ;;  %v402_v4 = vpop.f32.mrb[13].mxu1 }
 0x126   :  { %v321_v5 = vpop.f32.mrb[14].mxu0  ;;  %v403_v6 = vpop.f32.mrb[14].mxu1 }
 0x127   :  { %443 = vst.msk [vmem:[%s713_s3] sm:$0xf] %vm442_vm1, %v501_v0  ;;  %v502_v7 = vpack.c.bf16 %v423_v1, %v423_v1  ;;  %v409_v8 = vmax.f32 %v327_v2, %v400_v63  ;;  %v328_v9 = vmax.f32 %v246_v44, %v321_v5  ;;  %v323_v10 = vpop.f32.mrb[15].mxu0  ;;  %v405_v11 = vpop.f32.mrb[15].mxu1 }
 0x129   :  { %444 = vst.msk [vmem:[%s713_s3 + $0x4] sm:$0xf] %vm442_vm1, %v502_v7  ;;  %v420_v12 = vadd.f32 %v496_v51, %v409_v8  ;;  %v410_v13 = vmax.f32 %v328_v9, %v403_v6 }
 0x12b   :  { %v424_v14 = vmax.f32 %v420_v12, 0.0  ;;  %v421_v15 = vadd.f32 %v496_v51, %v410_v13 }
 0x12d   :  { %v503_v16 = vpack.c.bf16 %v424_v14, %v424_v14  ;;  %v425_v17 = vmax.f32 %v421_v15, 0.0 }
 0x12f   :  { %445 = vst.msk [vmem:[%s713_s3 + $0x8] sm:$0xf] %vm442_vm1, %v503_v16  ;;  %v504_v18 = vpack.c.bf16 %v425_v17, %v425_v17 }
 0x131   :  { %446 = vst.msk [vmem:[%s713_s3 + $0xc] sm:$0xf] %vm442_vm1, %v504_v18 }

// kernel: net_forward.7
= control target key start
LH: loop header
LB: loop body
LE: loop exit
PB: predicated region body
PF: predicated region fallthrough
CT: control target
= control target key end

     0   :  { %v767_v0 = vmov 0.0   ;;  %vm768_vm0 = vmmov 0   ;;  %vm171_vm1 = vcmask 261120   ;;  %vm556_vm2 = vcmask 519168   ;;  %s1001_s1 = inlined_call_operand.vmem [shape: bf16[288,64], index: 1, kind: input, shape index: {}]   ;;  %s1002_s0 = inlined_call_operand.vmem [shape: bf16[4,8,288], index: 0, kind: input, shape index: {}]   ;;  %s1003_s2 = inlined_call_operand.vmem [shape: f32[1,64], index: 2, kind: input, shape index: {}]   ;;  %s1004_s3 = inlined_call_operand.vmem [shape: bf16[8,64], index: 3, kind: output, shape index: {}]  }
   0x1   :  { %703 = vmatprep.subr.bf16.mxu1 %v767_v0  ;;  %v793_v1 = vld [vmem:[%s1001_s1 + $0x40] sm:$0xff]   ;;  %707 = vmatprep.mubr.msk.bf16.mxu1 %vm768_vm0, %v767_v0  ;;  %v812_v4 = vld [vmem:[%s1001_s1 + $0x48] sm:$0xff]   ;;  %v834_v8 = vld [vmem:[%s1001_s1 + $0x50] sm:$0xff]  }
   0x2   :  { %v800_v2 = vld [vmem:[%s1001_s1 + $0x80] sm:$0xff]   ;;  %603 = vmatprep.subr.bf16.mxu0 %v793_v1  ;;  %v819_v5 = vld [vmem:[%s1001_s1 + $0x88] sm:$0xff]   ;;  %v841_v9 = vld [vmem:[%s1001_s1 + $0x10] sm:$0xff]  }
   0x3   :  { %v806_v3 = vld [vmem:[%s1001_s1] sm:$0xff]   ;;  %704 = vmatpush3.bf16.msra.mxu1 %v800_v2  ;;  %v825_v6 = vld [vmem:[%s1001_s1 + $0x8] sm:$0xff]   ;;  %v847_v10 = vld [vmem:[%s1001_s1 + $0x58] sm:$0xff]  }
   0x4   :  { %604 = vmatpush3.bf16.msra.mxu0 %v806_v3  ;;  %705 = vmatprep.subr.bf16.mxu1 %v767_v0  ;;  %v743_v7 = vld [vmem:[%s1002_s0 + $0x8] ss:$0 sps:$4 sm:$0xff]   ;;  %v856_v11 = vld [vmem:[%s1001_s1 + $0x18] sm:$0xff]   ;;  %v862_v12 = vld [vmem:[%s1001_s1 + $0x60] sm:$0xff]  }
   0x5   :  { %605 = vmatprep.subr.bf16.mxu0 %v812_v4  ;;  %v870_v13 = vld [vmem:[%s1001_s1 + $0x20] sm:$0xff]   ;;  %v876_v14 = vld [vmem:[%s1001_s1 + $0x68] sm:$0xff]   ;;  %v896_v20 = vld [vmem:[%s1001_s1 + $0x70] sm:$0xff]  }
   0x6   :  { %v51_v15 = vld [vmem:[%s1002_s0] sm:$0xff]  ;;  %v584_v17 = vld [vmem:[%s1002_s0 + $0xc] sm:$0xff]  ;;  %v910_v22 = vld [vmem:[%s1001_s1 + $0x78] sm:$0xff]  }
   0x7   :  { %706 = vmatpush3.bf16.msra.mxu1 %v819_v5  ;;  %v563_v16 = vcombine.high %v51_v15, %v51_v15  ;;  %v890_v18 = vld [vmem:[%s1001_s1 + $0x28] sm:$0xff]   ;;  %v587_v19 = vcombine.high %v584_v17, %v584_v17  ;;  %v904_v21 = vld [vmem:[%s1001_s1 + $0x30] sm:$0xff]   ;;  %v918_v23 = vld [vmem:[%s1001_s1 + $0x38] sm:$0xff]   ;;  %v562_v24 = vcombine.low %v51_v15, %v51_v15  ;;  %v586_v25 = vcombine.low %v584_v17, %v584_v17 }
   0x8   :  { %606 = vmatpush3.bf16.msra.mxu0 %v825_v6  ;;  %628 = vmatprep.subr.bf16.mxu1 %v793_v1  ;;  %v760_v26 = vld [vmem:[%s1002_s0 + $0x14] ss:$0 sps:$4 sm:$0xff]   ;;  %v590_v27 = vld [vmem:[%s1002_s0 + $0x18] sm:$0xff]  ;;  %v596_v29 = vld [vmem:[%s1002_s0 + $0x24] sm:$0xff] }
   0x9   :  { %607 = vmatprep.subr.bf16.mxu0 %v834_v8  ;;  %207 = vmatprep.mubr.bf16.mxu0 %v563_v16  ;;  %v593_v28 = vcombine.high %v590_v27, %v590_v27  ;;  %v761_v30 = vld [vmem:[%s1002_s0 + $0x20] ss:$0 sps:$4 sm:$0xff]   ;;  %v599_v31 = vcombine.high %v596_v29, %v596_v29  ;;  %v592_v32 = vcombine.low %v590_v27, %v590_v27  ;;  %v766_v34 = vld [vmem:[%s1002_s0 + $0x2c] ss:$0 sps:$4 sm:$0xff]  }
   0xa   :  { %708 = vmatmul.mubr.msk.bf16.vlgmr.msra.gmra.mrb[0].mxu1 %vm171_vm1, %v743_v7  ;;  %v598_v33 = vcombine.low %v596_v29, %v596_v29 }
   0xb   :  { %629 = vmatpush3.bf16.msra.mxu1 %v806_v3  ;;  %303 = vmatprep.mubr.bf16.mxu1 %v587_v19 }
   0xc   :  { %608 = vmatpush3.bf16.msra.mxu0 %v841_v9  ;;  %630 = vmatprep.subr.bf16.mxu1 %v812_v4 }
   0xd   :  { %609 = vmatprep.subr.bf16.mxu0 %v847_v10 }
   0xf   :  { %631 = vmatpush3.bf16.msra.mxu1 %v825_v6 }
  0x10   :  { %610 = vmatpush3.bf16.msra.mxu0 %v856_v11  ;;  %632 = vmatprep.subr.bf16.mxu1 %v834_v8 }
  0x11   :  { %611 = vmatprep.subr.bf16.mxu0 %v862_v12 }
  0x13   :  { %633 = vmatpush3.bf16.msra.mxu1 %v841_v9 }
  0x14   :  { %612 = vmatpush3.bf16.msra.mxu0 %v870_v13  ;;  %634 = vmatprep.subr.bf16.mxu1 %v847_v10 }
  0x15   :  { %613 = vmatprep.subr.bf16.mxu0 %v876_v14 }
  0x17   :  { %635 = vmatpush3.bf16.msra.mxu1 %v856_v11 }
  0x18   :  { %614 = vmatpush3.bf16.msra.mxu0 %v890_v18  ;;  %636 = vmatprep.subr.bf16.mxu1 %v862_v12 }
  0x19   :  { %615 = vmatprep.subr.bf16.mxu0 %v896_v20 }
  0x1b   :  { %637 = vmatpush3.bf16.msra.mxu1 %v870_v13 }
  0x1c   :  { %616 = vmatpush3.bf16.msra.mxu0 %v904_v21  ;;  %638 = vmatprep.subr.bf16.mxu1 %v876_v14 }
  0x1d   :  { %617 = vmatprep.subr.bf16.mxu0 %v910_v22 }
  0x1f   :  { %639 = vmatpush3.bf16.msra.mxu1 %v890_v18 }
  0x20   :  { %618 = vmatpush3.bf16.msra.mxu0 %v918_v23  ;;  %640 = vmatprep.subr.bf16.mxu1 %v896_v20 }
  0x21   :  { %711 = vmatprep.subr.bf16.mxu0 %v767_v0 }
  0x23   :  { %208 = vmatmul.mubr.bf16.vlgmr.msra.gmra.mrb[0].mxu0 %v562_v24  ;;  %641 = vmatpush3.bf16.msra.mxu1 %v904_v21 }
  0x24   :  { %712 = vmatpush3.bf16.msra.mxu0 %v800_v2  ;;  %642 = vmatprep.subr.bf16.mxu1 %v910_v22 }
  0x25   :  { %713 = vmatprep.subr.bf16.mxu0 %v767_v0  ;;  %715 = vmatprep.mubr.msk.bf16.mxu0 %vm768_vm0, %v767_v0 }
  0x27   :  { %643 = vmatpush3.bf16.msra.mxu1 %v918_v23 }
  0x28   :  { %714 = vmatpush3.bf16.msra.mxu0 %v819_v5  ;;  %719 = vmatprep.subr.bf16.mxu1 %v767_v0 }
  0x29   :  { %653 = vmatprep.subr.bf16.mxu0 %v793_v1 }
  0x2a   :  { %304 = vmatmul.mubr.bf16.vlgmr.msra.gmra.mrb[4].mxu1 %v586_v25 }
  0x2b   :  { %716 = vmatmul.mubr.msk.bf16.vlgmr.msra.gmra.mrb[4].mxu0 %vm171_vm1, %v760_v26  ;;  %720 = vmatpush3.bf16.msra.mxu1 %v800_v2 }
  0x2c   :  { %654 = vmatpush3.bf16.msra.mxu0 %v806_v3  ;;  %721 = vmatprep.subr.bf16.mxu1 %v767_v0 }
  0x2d   :  { %655 = vmatprep.subr.bf16.mxu0 %v812_v4  ;;  %723 = vmatprep.mubr.msk.bf16.mxu1 %vm768_vm0, %v767_v0 }
  0x2e   :  { %400 = vmatprep.mubr.bf16.mxu0 %v593_v28 }
  0x2f   :  { %722 = vmatpush3.bf16.msra.mxu1 %v819_v5 }
  0x30   :  { %656 = vmatpush3.bf16.msra.mxu0 %v825_v6  ;;  %678 = vmatprep.subr.bf16.mxu1 %v793_v1 }
  0x31   :  { %657 = vmatprep.subr.bf16.mxu0 %v834_v8 }
  0x32   :  { %724 = vmatmul.mubr.msk.bf16.vlgmr.msra.gmra.mrb[8].mxu1 %vm171_vm1, %v761_v30 }
  0x33   :  { %679 = vmatpush3.bf16.msra.mxu1 %v806_v3  ;;  %497 = vmatprep.mubr.bf16.mxu1 %v599_v31 }
  0x34   :  { %658 = vmatpush3.bf16.msra.mxu0 %v841_v9  ;;  %680 = vmatprep.subr.bf16.mxu1 %v812_v4 }
  0x35   :  { %659 = vmatprep.subr.bf16.mxu0 %v847_v10 }
  0x37   :  { %681 = vmatpush3.bf16.msra.mxu1 %v825_v6 }
  0x38   :  { %660 = vmatpush3.bf16.msra.mxu0 %v856_v11  ;;  %682 = vmatprep.subr.bf16.mxu1 %v834_v8 }
  0x39   :  { %661 = vmatprep.subr.bf16.mxu0 %v862_v12 }
  0x3b   :  { %683 = vmatpush3.bf16.msra.mxu1 %v841_v9 }
  0x3c   :  { %662 = vmatpush3.bf16.msra.mxu0 %v870_v13  ;;  %684 = vmatprep.subr.bf16.mxu1 %v847_v10 }
  0x3d   :  { %663 = vmatprep.subr.bf16.mxu0 %v876_v14 }
  0x3f   :  { %685 = vmatpush3.bf16.msra.mxu1 %v856_v11 }
  0x40   :  { %664 = vmatpush3.bf16.msra.mxu0 %v890_v18  ;;  %686 = vmatprep.subr.bf16.mxu1 %v862_v12 }
  0x41   :  { %665 = vmatprep.subr.bf16.mxu0 %v896_v20 }
  0x43   :  { %687 = vmatpush3.bf16.msra.mxu1 %v870_v13  ;;  %v602_v13 = vld [vmem:[%s1003_s2] ss:$0 sm:$0xff] }
  0x44   :  { %666 = vmatpush3.bf16.msra.mxu0 %v904_v21  ;;  %688 = vmatprep.subr.bf16.mxu1 %v876_v14 }
  0x45   :  { %667 = vmatprep.subr.bf16.mxu0 %v910_v22 }
  0x47   :  { %689 = vmatpush3.bf16.msra.mxu1 %v890_v18 }
  0x48   :  { %668 = vmatpush3.bf16.msra.mxu0 %v918_v23  ;;  %690 = vmatprep.subr.bf16.mxu1 %v896_v20 }
  0x49   :  { %727 = vmatprep.subr.bf16.mxu0 %v767_v0 }
  0x4b   :  { %401 = vmatmul.mubr.bf16.vlgmr.msra.gmra.mrb[8].mxu0 %v592_v32  ;;  %691 = vmatpush3.bf16.msra.mxu1 %v904_v21 }
  0x4c   :  { %728 = vmatpush3.bf16.msra.mxu0 %v800_v2  ;;  %692 = vmatprep.subr.bf16.mxu1 %v910_v22 }
  0x4d   :  { %729 = vmatprep.subr.bf16.mxu0 %v767_v0  ;;  %731 = vmatprep.mubr.msk.bf16.mxu0 %vm768_vm0, %v767_v0 }
  0x4f   :  { %693 = vmatpush3.bf16.msra.mxu1 %v918_v23 }
  0x50   :  { %730 = vmatpush3.bf16.msra.mxu0 %v819_v5 }
  0x52   :  { %498 = vmatmul.mubr.bf16.vlgmr.msra.gmra.mrb[12].mxu1 %v598_v33 }
  0x53   :  { %732 = vmatmul.mubr.msk.bf16.vlgmr.msra.gmra.mrb[12].mxu0 %vm171_vm1, %v766_v34 }
  0xdd   :  { %v249_v35 = vpop.f32.mrb[0].mxu1 }
  0xde   :  { %v709_v36 = vpop.f32.mrb[1].mxu1 }
  0xdf   :  { %v252_v37 = vpop.f32.mrb[2].mxu1 }
  0xe0   :  { %v710_v38 = vpop.f32.mrb[3].mxu1 }
  0xf6   :  { %v619_v39 = vpop.f32.mrb[0].mxu0 }
  0xf7   :  { %v620_v40 = vpop.f32.mrb[1].mxu0 }
  0xf8   :  { %v621_v41 = vadd.f32 %v620_v40, %v619_v39  ;;  %v622_v42 = vpop.f32.mrb[2].mxu0 }
  0xf9   :  { %v623_v43 = vpop.f32.mrb[3].mxu0 }
  0xfa   :  { %v250_v44 = vadd.f32 %v621_v41, %v249_v35 }
  0xfd   :  { %v644_v45 = vpop.f32.mrb[4].mxu1 }
  0xfe   :  { %v645_v46 = vpop.f32.mrb[5].mxu1  ;;  %v345_v47 = vpop.f32.mrb[4].mxu0 }
  0xff   :  { %v646_v48 = vadd.f32 %v645_v46, %v644_v45  ;;  %v647_v49 = vpop.f32.mrb[6].mxu1  ;;  %v717_v50 = vpop.f32.mrb[5].mxu0 }
 0x100   :  { %v648_v51 = vpop.f32.mrb[7].mxu1  ;;  %v348_v52 = vpop.f32.mrb[6].mxu0 }
 0x101   :  { %v346_v53 = vadd.f32 %v646_v48, %v345_v47  ;;  %v718_v54 = vpop.f32.mrb[7].mxu0 }
 0x103   :  { %v351_v55 = vmax.f32 %v250_v44, %v346_v53 }
 0x105   :  { %v442_v56 = vpop.f32.mrb[8].mxu1 }
 0x106   :  { %v725_v57 = vpop.f32.mrb[9].mxu1 }
 0x107   :  { %v445_v58 = vpop.f32.mrb[10].mxu1 }
 0x108   :  { %v726_v59 = vpop.f32.mrb[11].mxu1 }
 0x11e   :  { %v669_v60 = vpop.f32.mrb[8].mxu0 }
 0x11f   :  { %v670_v61 = vpop.f32.mrb[9].mxu0 }
 0x120   :  { %v671_v62 = vadd.f32 %v670_v61, %v669_v60  ;;  %v672_v63 = vpop.f32.mrb[10].mxu0 }
 0x121   :  { %v673_v0 = vpop.f32.mrb[11].mxu0 }
 0x122   :  { %v443_v1 = vadd.f32 %v671_v62, %v442_v56 }
 0x124   :  { %v448_v2 = vmax.f32 %v351_v55, %v443_v1 }
 0x125   :  { %v694_v3 = vpop.f32.mrb[12].mxu1 }
 0x126   :  { %v695_v4 = vpop.f32.mrb[13].mxu1  ;;  %v539_v5 = vpop.f32.mrb[12].mxu0 }
 0x127   :  { %v696_v6 = vadd.f32 %v695_v4, %v694_v3  ;;  %v697_v7 = vpop.f32.mrb[14].mxu1  ;;  %v733_v8 = vpop.f32.mrb[13].mxu0 }
 0x128   :  { %v698_v9 = vpop.f32.mrb[15].mxu1  ;;  %v542_v10 = vpop.f32.mrb[14].mxu0 }
 0x129   :  { %v540_v11 = vadd.f32 %v696_v6, %v539_v5  ;;  %v734_v12 = vpop.f32.mrb[15].mxu0 }
 0x12b   :  { %v545_v14 = vmax.f32 %v448_v2, %v540_v11 }
 0x12d   :  { %v553_v15 = vadd.f32 %v602_v13, %v545_v14 }
 0x12f   :  { %v554_v16 = vmax.f32 %v553_v15, 0.0 }
 0x131   :  { %v555_v17 = vpack.c.bf16 %v554_v16, %v554_v16 }
 0x133   :  { %557 = vst.msk [vmem:[%s1004_s3] sm:$0xf] %vm556_vm2, %v555_v17 }

// kernel: net_forward.8
= control target key start
LH: loop header
LB: loop body
LE: loop exit
PB: predicated region body
PF: predicated region fallthrough
CT: control target
= control target key end

     0   :  { %s1070_s12 = smov 0   ;;  %s1072_s13 = smov 0   ;;  %s1259_s0 = inlined_call_operand.vmem [shape: bf16[2,256], index: 0, kind: input, shape index: {}]   ;;  %s1260_s1 = inlined_call_operand.vmem [shape: bf16[256,512], index: 1, kind: input, shape index: {}]   ;;  %s1261_s2 = inlined_call_operand.vmem [shape: f32[1,512], index: 2, kind: input, shape index: {}]   ;;  %s1262_s3 = inlined_call_operand.vmem [shape: bf16[2,512], index: 3, kind: output, shape index: {}]  }
   0x1   :  { %s1074_s14 = smov 0   ;;  %s1076_s15 = smov 0  }
   0x2   :  { %s1078_s16 = smov 0  }
   0x3 LB: > { %s28_s17 = sadd.s32 1, %s1041_s15  ;;  %p76_p1 = scmp.ne.s32.totalorder %s1033_s13, %s1029_s12  ;;  %s1045_s16 = sphi %s1078_s16, %s13_s16   ;;  %s1041_s15 = sphi %s1076_s15, %s1266_s15   ;;  %s1037_s14 = sphi %s1074_s14, %s1265_s14   ;;  %s1033_s13 = sphi %s1072_s13, %s1264_s13   ;;  %s1029_s12 = sphi %s1070_s12, %s1263_s12  }
   0x4   : > { %p30_p0 = scmp.ge.s32.totalorder %s28_s17, 2  ;;  %p77_p2 = scmp.eq.s32.totalorder %s1045_s16, 0 }
   0x5   : > { %s69_s19 = sadd.s32 1, %s1033_s13  ;;  %p870_p5 = scmp.ge.s32.totalorder %s1045_s16, 2 }
   0x6   : > { %s1268_s17 = smov (%p30_p0, %s28_s17), 0  ;;  %p78_p3 = por %p77_p2, %p76_p1 }
   0x7   : > { %s65_s18 = ssub.s32 %s1041_s15, %s1268_s17  ;;  %168 = sbr.rel (%p870_p5) target bundleno = 34 (0x22), region = 20 }
   0x8   : > { %p67_p4 = scmp.eq.s32.totalorder %s65_s18, 0 }
   0xa   : > { %s1105_s20 = scalar_select %p67_p4, %s1033_s13, %s69_s19  }
   0xe   : > { %171 = sbr.rel (!%p78_p3) target bundleno = 34 (0x22), region = 24  ;;  %s173_s21 = sand.u32 (%p78_p3), 1, %s1033_s13  }
   0xf   : > { %s915_s22 = sshll.u32 (%p78_p3), %s1041_s15, 3  ;;  %s871_s23 = sshll.u32 (%p78_p3), %s173_s21, 8 }
  0x10   : > { %s1113_s26 = scalar_lea.vmem (%p78_p3), %s1260_s1, %s915_s22  ;;  %s1118_s27 = scalar_lea.vmem (%p78_p3), [#allocation3], %s871_s23 }
  0x11   : > { %v271_v0 = vld [vmem:[%s1113_s26] sm:$0xff] (%p78_p3)  ;;  %v273_v1 = vld [vmem:[%s1113_s26 + $0x10] sm:$0xff] (%p78_p3) }
  0x12   : > { %v275_v2 = vld [vmem:[%s1113_s26 + $0x20] sm:$0xff] (%p78_p3)  ;;  %272 = vst [vmem:[%s1118_s27] sm:$0xff] (%p78_p3), %v271_v0  ;;  %274 = vst [vmem:[%s1118_s27 + $0x8] sm:$0xff] (%p78_p3), %v273_v1  ;;  %v277_v3 = vld [vmem:[%s1113_s26 + $0x30] sm:$0xff] (%p78_p3) }
  0x13   : > { %276 = vst [vmem:[%s1118_s27 + $0x10] sm:$0xff] (%p78_p3), %v275_v2  ;;  %v279_v4 = vld [vmem:[%s1113_s26 + $0x40] sm:$0xff] (%p78_p3)  ;;  %v281_v5 = vld [vmem:[%s1113_s26 + $0x50] sm:$0xff] (%p78_p3)  ;;  %278 = vst [vmem:[%s1118_s27 + $0x18] sm:$0xff] (%p78_p3), %v277_v3 }
  0x14   : > { %280 = vst [vmem:[%s1118_s27 + $0x20] sm:$0xff] (%p78_p3), %v279_v4  ;;  %282 = vst [vmem:[%s1118_s27 + $0x28] sm:$0xff] (%p78_p3), %v281_v5  ;;  %v283_v6 = vld [vmem:[%s1113_s26 + $0x60] sm:$0xff] (%p78_p3)  ;;  %v285_v7 = vld [vmem:[%s1113_s26 + $0x70] sm:$0xff] (%p78_p3) }
  0x15   : > { %v287_v8 = vld [vmem:[%s1113_s26 + $0x80] sm:$0xff]  ;;  %284 = vst [vmem:[%s1118_s27 + $0x30] sm:$0xff] %v283_v6  ;;  %286 = vst [vmem:[%s1118_s27 + $0x38] sm:$0xff] %v285_v7  ;;  %v289_v9 = vld [vmem:[%s1113_s26 + $0x90] sm:$0xff] }
  0x16   : > { %288 = vst [vmem:[%s1118_s27 + $0x40] sm:$0xff] %v287_v8  ;;  %v291_v10 = vld [vmem:[%s1113_s26 + $0xa0] sm:$0xff]  ;;  %v293_v11 = vld [vmem:[%s1113_s26 + $0xb0] sm:$0xff]  ;;  %290 = vst [vmem:[%s1118_s27 + $0x48] sm:$0xff] %v289_v9 }
  0x17   : > { %292 = vst [vmem:[%s1118_s27 + $0x50] sm:$0xff] %v291_v10  ;;  %294 = vst [vmem:[%s1118_s27 + $0x58] sm:$0xff] %v293_v11  ;;  %v295_v12 = vld [vmem:[%s1113_s26 + $0xc0] sm:$0xff]  ;;  %v297_v13 = vld [vmem:[%s1113_s26 + $0xd0] sm:$0xff] }
  0x18   : > { %v299_v14 = vld [vmem:[%s1113_s26 + $0xe0] sm:$0xff]  ;;  %296 = vst [vmem:[%s1118_s27 + $0x60] sm:$0xff] %v295_v12  ;;  %298 = vst [vmem:[%s1118_s27 + $0x68] sm:$0xff] %v297_v13  ;;  %v301_v15 = vld [vmem:[%s1113_s26 + $0xf0] sm:$0xff] }
  0x19   : > { %300 = vst [vmem:[%s1118_s27 + $0x70] sm:$0xff] %v299_v14  ;;  %v303_v16 = vld [vmem:[%s1113_s26 + $0x100] sm:$0xff]  ;;  %v305_v17 = vld [vmem:[%s1113_s26 + $0x110] sm:$0xff]  ;;  %302 = vst [vmem:[%s1118_s27 + $0x78] sm:$0xff] %v301_v15 }
  0x1a   : > { %304 = vst [vmem:[%s1118_s27 + $0x80] sm:$0xff] %v303_v16  ;;  %306 = vst [vmem:[%s1118_s27 + $0x88] sm:$0xff] %v305_v17  ;;  %v307_v18 = vld [vmem:[%s1113_s26 + $0x120] sm:$0xff]  ;;  %v309_v19 = vld [vmem:[%s1113_s26 + $0x130] sm:$0xff] }
  0x1b   : > { %v311_v20 = vld [vmem:[%s1113_s26 + $0x140] sm:$0xff]  ;;  %308 = vst [vmem:[%s1118_s27 + $0x90] sm:$0xff] %v307_v18  ;;  %310 = vst [vmem:[%s1118_s27 + $0x98] sm:$0xff] %v309_v19  ;;  %v313_v21 = vld [vmem:[%s1113_s26 + $0x150] sm:$0xff] }
  0x1c   : > { %312 = vst [vmem:[%s1118_s27 + $0xa0] sm:$0xff] %v311_v20  ;;  %v315_v22 = vld [vmem:[%s1113_s26 + $0x160] sm:$0xff]  ;;  %v317_v23 = vld [vmem:[%s1113_s26 + $0x170] sm:$0xff]  ;;  %314 = vst [vmem:[%s1118_s27 + $0xa8] sm:$0xff] %v313_v21 }
  0x1d   : > { %316 = vst [vmem:[%s1118_s27 + $0xb0] sm:$0xff] %v315_v22  ;;  %318 = vst [vmem:[%s1118_s27 + $0xb8] sm:$0xff] %v317_v23  ;;  %v319_v24 = vld [vmem:[%s1113_s26 + $0x180] sm:$0xff]  ;;  %v321_v25 = vld [vmem:[%s1113_s26 + $0x190] sm:$0xff] }
  0x1e   : > { %v323_v26 = vld [vmem:[%s1113_s26 + $0x1a0] sm:$0xff]  ;;  %320 = vst [vmem:[%s1118_s27 + $0xc0] sm:$0xff] %v319_v24  ;;  %322 = vst [vmem:[%s1118_s27 + $0xc8] sm:$0xff] %v321_v25  ;;  %v325_v27 = vld [vmem:[%s1113_s26 + $0x1b0] sm:$0xff] }
  0x1f   : > { %324 = vst [vmem:[%s1118_s27 + $0xd0] sm:$0xff] %v323_v26  ;;  %v327_v28 = vld [vmem:[%s1113_s26 + $0x1c0] sm:$0xff]  ;;  %v329_v29 = vld [vmem:[%s1113_s26 + $0x1d0] sm:$0xff]  ;;  %326 = vst [vmem:[%s1118_s27 + $0xd8] sm:$0xff] %v325_v27 }
  0x20   : > { %328 = vst [vmem:[%s1118_s27 + $0xe0] sm:$0xff] %v327_v28  ;;  %330 = vst [vmem:[%s1118_s27 + $0xe8] sm:$0xff] %v329_v29  ;;  %v331_v30 = vld [vmem:[%s1113_s26 + $0x1e0] sm:$0xff]  ;;  %v333_v31 = vld [vmem:[%s1113_s26 + $0x1f0] sm:$0xff] }
  0x21   : > { %332 = vst [vmem:[%s1118_s27 + $0xf0] sm:$0xff] %v331_v30  ;;  %334 = vst [vmem:[%s1118_s27 + $0xf8] sm:$0xff] %v333_v31 }
  0x22 PF: > { %p874_p6 = scmp.ge.s32.totalorder %s1045_s16, 1  ;;  %p347_p7 = scmp.lt.s32.totalorder %s1045_s16, 3 }
  0x24   : > { %p348_p8 = pnand %p874_p6, %p347_p7 }
  0x25   : > { %s354_s28 = sand.u32 (!%p348_p8), 1, %s1029_s12   ;;  %v1187_v32 = vld.sshfl [vmem:[%s1259_s0] sm:$0x11 pattern:$0x75316420] (!%p348_p8)  ;;  %v468_v33 = vlaneseq (!%p348_p8)  ;;  %v1048_v10 = vmov (!%p348_p8), 0.0  }
  0x26   : > { %351 = sbr.rel (%p348_p8) target bundleno = 345 (0x159), region = 66  ;;  %s875_s4 = sshll.u32 (!%p348_p8), %s354_s28, 8  ;;  %v1047_v34 = vmov (!%p348_p8), 1966171168   ;;  %v464_v39 = vcombine.high (!%p348_p8), %v1187_v32, %v1187_v32  ;;  %421 = vst [vmem:[#allocation2] sm:$0xf] (!%p348_p8), %v1048_v10 }
  0x27   : > { %v466_v35 = vunpack.c.l.s4 (!%p348_p8), %v1047_v34  ;;  %v1189_v36 = vshrl.u32 (!%p348_p8), %v468_v33, 7  ;;  %s1191_s5 = scalar_lea.vmem (!%p348_p8), [#allocation3], %s875_s4  ;;  %s876_s6 = sshll.u32 (!%p348_p8), %s1037_s14, 1  ;;  %v1049_v11 = vmov (!%p348_p8), 1983009808  }
  0x28   : > { %v959_v37 = vld [vmem:[%s1191_s5 + $0x4] ss:$8 sps:$4 sm:$0xff] (!%p348_p8)   ;;  %v961_v38 = vld [vmem:[%s1191_s5] ss:$8 sps:$4 sm:$0xff] (!%p348_p8)   ;;  %v962_v41 = vld [vmem:[%s1191_s5 + $0x14] ss:$8 sps:$4 sm:$0xff] (!%p348_p8)   ;;  %v686_v12 = vunpack.c.l.s4 (!%p348_p8), %v1049_v11 }
  0x29   : > { %v467_v40 = vunpack.c.0.s8 (!%p348_p8), %v466_v35  ;;  %641 = vmatprep.subr.bf16.mxu0 (!%p348_p8), %v959_v37  ;;  %v964_v42 = vld [vmem:[%s1191_s5 + $0x10] ss:$8 sps:$4 sm:$0xff] (!%p348_p8)   ;;  %v965_v44 = vld [vmem:[%s1191_s5 + $0x24] ss:$8 sps:$4 sm:$0xff] (!%p348_p8)   ;;  %v967_v46 = vld [vmem:[%s1191_s5 + $0x20] ss:$8 sps:$4 sm:$0xff] (!%p348_p8)  }
  0x2a   : > { %642 = vmatpush1.bf16.msra.mxu0 (!%p348_p8), %v961_v38  ;;  %v968_v47 = vld [vmem:[%s1191_s5 + $0x34] ss:$8 sps:$4 sm:$0xff] (!%p348_p8)   ;;  %v970_v48 = vld [vmem:[%s1191_s5 + $0x30] ss:$8 sps:$4 sm:$0xff] (!%p348_p8)   ;;  %v971_v49 = vld [vmem:[%s1191_s5 + $0x44] ss:$8 sps:$4 sm:$0xff] (!%p348_p8)   ;;  %v687_v13 = vunpack.c.0.s8 (!%p348_p8), %v686_v12 }
  0x2b   : > { %v1200_v43 = vsub.s32 (!%p348_p8), %v467_v40, %v1189_v36  ;;  %643 = vmatprep.subr.bf16.mxu0 (!%p348_p8), %v962_v41  ;;  %v973_v50 = vld [vmem:[%s1191_s5 + $0x40] ss:$8 sps:$4 sm:$0xff] (!%p348_p8)   ;;  %v974_v51 = vld [vmem:[%s1191_s5 + $0x54] ss:$8 sps:$4 sm:$0xff] (!%p348_p8)   ;;  %v976_v52 = vld [vmem:[%s1191_s5 + $0x50] ss:$8 sps:$4 sm:$0xff] (!%p348_p8)  }
  0x2c   : > { %v977_v53 = vld [vmem:[%s1191_s5 + $0x64] ss:$8 sps:$4 sm:$0xff] (!%p348_p8)   ;;  %v979_v54 = vld [vmem:[%s1191_s5 + $0x60] ss:$8 sps:$4 sm:$0xff] (!%p348_p8)   ;;  %v980_v55 = vld [vmem:[%s1191_s5 + $0x74] ss:$8 sps:$4 sm:$0xff] (!%p348_p8)   ;;  %v690_v15 = vsub.s32 (!%p348_p8), %v687_v13, %v1189_v36 }
  0x2d   : > { %v478_v45 = vrot.slane %v464_v39, %v1200_v43  ;;  %v982_v56 = vld [vmem:[%s1191_s5 + $0x70] ss:$8 sps:$4 sm:$0xff]   ;;  %v983_v57 = vld [vmem:[%s1191_s5 + $0x84] ss:$8 sps:$4 sm:$0xff]   ;;  %v985_v58 = vld [vmem:[%s1191_s5 + $0x80] ss:$8 sps:$4 sm:$0xff]   ;;  %v471_v9 = vrot.slane %v1187_v32, %v1200_v43 }
  0x2e   : > { %644 = vmatpush1.bf16.msra.mxu0 %v964_v42  ;;  %v986_v59 = vld [vmem:[%s1191_s5 + $0x94] ss:$8 sps:$4 sm:$0xff]   ;;  %v988_v60 = vld [vmem:[%s1191_s5 + $0x90] ss:$8 sps:$4 sm:$0xff]   ;;  %v989_v61 = vld [vmem:[%s1191_s5 + $0xa4] ss:$8 sps:$4 sm:$0xff]  }
  0x2f   : > { %673 = vmatprep.mubr.bf16.mxu0 %v478_v45  ;;  %645 = vmatprep.subr.bf16.mxu0 %v965_v44  ;;  %v991_v62 = vld [vmem:[%s1191_s5 + $0xa0] ss:$8 sps:$4 sm:$0xff]   ;;  %v992_v63 = vld [vmem:[%s1191_s5 + $0xb4] ss:$8 sps:$4 sm:$0xff]   ;;  %v994_v0 = vld [vmem:[%s1191_s5 + $0xb0] ss:$8 sps:$4 sm:$0xff]  }
  0x30   : > { %v995_v1 = vld [vmem:[%s1191_s5 + $0xc4] ss:$8 sps:$4 sm:$0xff]   ;;  %v997_v2 = vld [vmem:[%s1191_s5 + $0xc0] ss:$8 sps:$4 sm:$0xff]   ;;  %v998_v3 = vld [vmem:[%s1191_s5 + $0xd4] ss:$8 sps:$4 sm:$0xff]  }
  0x31   : > { %v1000_v4 = vld [vmem:[%s1191_s5 + $0xd0] ss:$8 sps:$4 sm:$0xff]   ;;  %v1001_v5 = vld [vmem:[%s1191_s5 + $0xe4] ss:$8 sps:$4 sm:$0xff]   ;;  %v1003_v6 = vld [vmem:[%s1191_s5 + $0xe0] ss:$8 sps:$4 sm:$0xff]  }
  0x32   : > { %646 = vmatpush1.bf16.msra.mxu0 %v967_v46  ;;  %v1004_v7 = vld [vmem:[%s1191_s5 + $0xf4] ss:$8 sps:$4 sm:$0xff]   ;;  %v1006_v8 = vld [vmem:[%s1191_s5 + $0xf0] ss:$8 sps:$4 sm:$0xff]   ;;  %p404_p9 = scmp.lt.s32.totalorder %s876_s6, 3  ;;  %v703_v16 = vsub.s32 0, %v1189_v36 }
  0x33   : > { %647 = vmatprep.subr.bf16.mxu0 %v968_v47  ;;  %v707_v17 = vsub.s32 1, %v1189_v36  ;;  %v422_v22 = vld [vmem:[#allocation2] sm:$0xf] }
  0x34   : > { %s1270_s6 = smov (!%p404_p9, %s876_s6), 3 }
  0x35   : > { %s406_s9 = scalar_lea.vmem %s1261_s2, %s1270_s6  ;;  %s415_s12 = scalar_lea.vmem %s1262_s3, %s1270_s6 }
  0x36   : > { %648 = vmatpush1.bf16.msra.mxu0 %v970_v48  ;;  %v699_v19 = vld [vmem:[%s406_s9] sm:$0x3] }
  0x37   : > { %649 = vmatprep.subr.bf16.mxu0 %v971_v49  ;;  %v704_v25 = vrot.slane %v699_v19, %v703_v16  ;;  %v708_v26 = vrot.slane %v699_v19, %v707_v17 }
  0x39   : > { %v709_v28 = vcombine.low %v704_v25, %v708_v26 }
  0x3a   : > { %650 = vmatpush1.bf16.msra.mxu0 %v973_v50 }
  0x3b   : > { %651 = vmatprep.subr.bf16.mxu0 %v974_v51  ;;  %v716_v29 = vrot.slane %v709_v28, %v690_v15 }
  0x3e   : > { %652 = vmatpush1.bf16.msra.mxu0 %v976_v52 }
  0x3f   : > { %653 = vmatprep.subr.bf16.mxu0 %v977_v53 }
  0x42   : > { %654 = vmatpush1.bf16.msra.mxu0 %v979_v54 }
  0x43   : > { %655 = vmatprep.subr.bf16.mxu0 %v980_v55 }
  0x46   : > { %656 = vmatpush1.bf16.msra.mxu0 %v982_v56 }
  0x47   : > { %657 = vmatprep.subr.bf16.mxu0 %v983_v57 }
  0x4a   : > { %658 = vmatpush1.bf16.msra.mxu0 %v985_v58 }
  0x4b   : > { %659 = vmatprep.subr.bf16.mxu0 %v986_v59 }
  0x4e   : > { %660 = vmatpush1.bf16.msra.mxu0 %v988_v60 }
  0x4f   : > { %661 = vmatprep.subr.bf16.mxu0 %v989_v61 }
  0x52   : > { %662 = vmatpush1.bf16.msra.mxu0 %v991_v62 }
  0x53   : > { %663 = vmatprep.subr.bf16.mxu0 %v992_v63 }
  0x56   : > { %664 = vmatpush1.bf16.msra.mxu0 %v994_v0 }
  0x57   : > { %665 = vmatprep.subr.bf16.mxu0 %v995_v1 }
  0x5a   : > { %666 = vmatpush1.bf16.msra.mxu0 %v997_v2 }
  0x5b   : > { %667 = vmatprep.subr.bf16.mxu0 %v998_v3 }
  0x5e   : > { %668 = vmatpush1.bf16.msra.mxu0 %v1000_v4 }
  0x5f   : > { %669 = vmatprep.subr.bf16.mxu0 %v1001_v5 }
  0x62   : > { %670 = vmatpush1.bf16.msra.mxu0 %v1003_v6 }
  0x63   : > { %671 = vmatprep.subr.bf16.mxu0 %v1004_v7 }
  0x66   : > { %672 = vmatpush1.bf16.msra.mxu0 %v1006_v8 }
  0x69   : > { %674 = vmatmul.mubr.bf16.vlgmr.msra.gmra.mrb[0].mxu0 %v471_v9 }
 0x13c   : > { %v675_v14 = vpop.f32.mrb[0].mxu0 }
 0x13d   : > { %v677_v18 = vpop.f32.mrb[1].mxu0 }
 0x13e   : > { %v684_v20 = vcombine.low %v675_v14, %v677_v18  ;;  %v679_v21 = vpop.f32.mrb[2].mxu0 }
 0x13f   : > { %v680_v23 = vpop.f32.mrb[3].mxu0 }
 0x140   : > { %v691_v24 = vrot.slane %v684_v20, %v690_v15 }
 0x142   : > { %v693_v27 = vadd.f32 %v691_v24, %v422_v22 }
 0x144   : > { %694 = vst [vmem:[#allocation2] sm:$0xf] %v693_v27 }
 0x14b   : > { %v698_v30 = vld [vmem:[#allocation2] sm:$0xf] }
 0x14c   : > { %v718_v31 = vadd.f32 %v716_v29, %v698_v30 }
 0x14e   : > { %v719_v32 = vmax.f32 %v718_v31, 0.0 }
 0x150   : > { %v727_v33 = vrot.slane %v719_v32, %v690_v15 }
 0x152   : > { %v728_v34 = vcombine.high %v727_v33, %v727_v33 }
 0x154   : > { %v911_v35 = vpack.c.bf16 %v728_v34, %v727_v33 }
 0x156   : > { %v742_v36 = vrot.slane %v911_v35, %v1200_v43 }
 0x158   : > { %912 = vst.sshfl [vmem:[%s415_s12] sm:$0x5 pattern:$0x73625140] %v742_v36 }
 0x159 PF: > { %s13_s16 = sadd.s32 1, %s1045_s16   ;;  %s1263_s12 = smov %s1033_s13 }
 0x15a   : > { %p10_p10 = scmp.ge.s32.totalorder %s13_s16, 4   ;;  %s1264_s13 = smov %s1105_s20 }
 0x15b   : > { %s1265_s14 = smov %s1041_s15  ;;  %s1266_s15 = smov %s1268_s17 }
 0x15c   :  { %12 = sbr.rel (!%p10_p10) target bundleno = 3 (0x3), region = 119 }

// kernel: net_forward.9
= control target key start
LH: loop header
LB: loop body
LE: loop exit
PB: predicated region body
PF: predicated region fallthrough
CT: control target
= control target key end

     0   :  { %v99_v30 = vlaneseq  ;;  %v554_v34 = vmov 1966171168   ;;  %s691_s0 = inlined_call_operand.vmem [shape: bf16[2,512], index: 0, kind: input, shape index: {}]   ;;  %s692_s1 = inlined_call_operand.vmem [shape: bf16[512,128], index: 1, kind: input, shape index: {}]   ;;  %s693_s2 = inlined_call_operand.vmem [shape: f32[1,128], index: 2, kind: input, shape index: {}]   ;;  %s694_s3 = inlined_call_operand.hbm [shape: f32[2,128], index: 3, kind: output, shape index: {}]  }
   0x1   :  { %v498_v0 = vld [vmem:[%s692_s1 + $0x40] sm:$0xff]   ;;  %v502_v4 = vld [vmem:[%s692_s1 + $0x48] sm:$0xff]   ;;  %v506_v8 = vld [vmem:[%s692_s1 + $0x50] sm:$0xff]   ;;  %v97_v35 = vunpack.c.l.s4 %v554_v34 }
   0x2   :  { %v499_v1 = vld [vmem:[%s692_s1 + $0xc0] sm:$0xff]   ;;  %451 = vmatprep.subr.bf16.mxu0 %v498_v0  ;;  %v503_v5 = vld [vmem:[%s692_s1 + $0xc8] sm:$0xff]   ;;  %v507_v9 = vld [vmem:[%s692_s1 + $0xd0] sm:$0xff]   ;;  %v100_v36 = vshrl.u32 %v99_v30, 7 }
   0x3   :  { %v500_v2 = vld [vmem:[%s692_s1] sm:$0xff]   ;;  %473 = vmatprep.subr.bf16.mxu1 %v499_v1  ;;  %v504_v6 = vld [vmem:[%s692_s1 + $0x8] sm:$0xff]   ;;  %v508_v10 = vld [vmem:[%s692_s1 + $0x10] sm:$0xff]  }
   0x4   :  { %v501_v3 = vld [vmem:[%s692_s1 + $0x80] sm:$0xff]   ;;  %452 = vmatpush3.bf16.msra.mxu0 %v500_v2  ;;  %v505_v7 = vld [vmem:[%s692_s1 + $0x88] sm:$0xff]   ;;  %v509_v11 = vld [vmem:[%s692_s1 + $0x90] sm:$0xff]  }
   0x5   :  { %474 = vmatpush3.bf16.msra.mxu1 %v501_v3  ;;  %453 = vmatprep.subr.bf16.mxu0 %v502_v4  ;;  %v510_v12 = vld [vmem:[%s692_s1 + $0x58] sm:$0xff]   ;;  %v514_v16 = vld [vmem:[%s692_s1 + $0x60] sm:$0xff]   ;;  %v518_v20 = vld [vmem:[%s692_s1 + $0x68] sm:$0xff]  }
   0x6   :  { %475 = vmatprep.subr.bf16.mxu1 %v503_v5  ;;  %v511_v13 = vld [vmem:[%s692_s1 + $0xd8] sm:$0xff]   ;;  %v515_v17 = vld [vmem:[%s692_s1 + $0xe0] sm:$0xff]   ;;  %v519_v21 = vld [vmem:[%s692_s1 + $0xe8] sm:$0xff]  }
   0x7   :  { %v512_v14 = vld [vmem:[%s692_s1 + $0x18] sm:$0xff]   ;;  %v516_v18 = vld [vmem:[%s692_s1 + $0x20] sm:$0xff]   ;;  %v520_v22 = vld [vmem:[%s692_s1 + $0x28] sm:$0xff]  }
   0x8   :  { %454 = vmatpush3.bf16.msra.mxu0 %v504_v6  ;;  %v513_v15 = vld [vmem:[%s692_s1 + $0x98] sm:$0xff]   ;;  %v517_v19 = vld [vmem:[%s692_s1 + $0xa0] sm:$0xff]   ;;  %v521_v23 = vld [vmem:[%s692_s1 + $0xa8] sm:$0xff]  }
   0x9   :  { %476 = vmatpush3.bf16.msra.mxu1 %v505_v7  ;;  %455 = vmatprep.subr.bf16.mxu0 %v506_v8  ;;  %v522_v24 = vld [vmem:[%s692_s1 + $0x70] sm:$0xff]   ;;  %v526_v28 = vld [vmem:[%s692_s1 + $0x78] sm:$0xff]   ;;  %v417_v33 = vld.sshfl [vmem:[%s691_s0] sm:$0x33 pattern:$0x75316420] }
   0xa   :  { %477 = vmatprep.subr.bf16.mxu1 %v507_v9  ;;  %v523_v25 = vld [vmem:[%s692_s1 + $0xf0] sm:$0xff]   ;;  %v527_v29 = vld [vmem:[%s692_s1 + $0xf8] sm:$0xff]  }
   0xb   :  { %v524_v26 = vld [vmem:[%s692_s1 + $0x30] sm:$0xff]   ;;  %v528_v31 = vld [vmem:[%s692_s1 + $0x38] sm:$0xff]  }
   0xc   :  { %456 = vmatpush3.bf16.msra.mxu0 %v508_v10  ;;  %v525_v27 = vld [vmem:[%s692_s1 + $0xb0] sm:$0xff]   ;;  %v529_v32 = vld [vmem:[%s692_s1 + $0xb8] sm:$0xff]  }
   0xd   :  { %478 = vmatpush3.bf16.msra.mxu1 %v509_v11  ;;  %457 = vmatprep.subr.bf16.mxu0 %v510_v12 }
   0xe   :  { %479 = vmatprep.subr.bf16.mxu1 %v511_v13 }
  0x10   :  { %458 = vmatpush3.bf16.msra.mxu0 %v512_v14 }
  0x11   :  { %480 = vmatpush3.bf16.msra.mxu1 %v513_v15  ;;  %459 = vmatprep.subr.bf16.mxu0 %v514_v16 }
  0x12   :  { %481 = vmatprep.subr.bf16.mxu1 %v515_v17 }
  0x14   :  { %460 = vmatpush3.bf16.msra.mxu0 %v516_v18 }
  0x15   :  { %482 = vmatpush3.bf16.msra.mxu1 %v517_v19  ;;  %461 = vmatprep.subr.bf16.mxu0 %v518_v20 }
  0x16   :  { %483 = vmatprep.subr.bf16.mxu1 %v519_v21 }
  0x18   :  { %462 = vmatpush3.bf16.msra.mxu0 %v520_v22 }
  0x19   :  { %484 = vmatpush3.bf16.msra.mxu1 %v521_v23  ;;  %463 = vmatprep.subr.bf16.mxu0 %v522_v24 }
  0x1a   :  { %485 = vmatprep.subr.bf16.mxu1 %v523_v25 }
  0x1c   :  { %464 = vmatpush3.bf16.msra.mxu0 %v524_v26 }
  0x1d   :  { %486 = vmatpush3.bf16.msra.mxu1 %v525_v27  ;;  %465 = vmatprep.subr.bf16.mxu0 %v526_v28 }
  0x1e   :  { %487 = vmatprep.subr.bf16.mxu1 %v527_v29 }
  0x20   :  { %466 = vmatpush3.bf16.msra.mxu0 %v528_v31 }
  0x21   :  { %488 = vmatpush3.bf16.msra.mxu1 %v529_v32 }
  0x22   :  { %8 = vsyncpa [#allocation4], 0  ;;  %v95_v37 = vcombine.high %v417_v33, %v417_v33  ;;  %v98_v38 = vunpack.c.0.s8 %v97_v35  ;;  %v555_v44 = vmov 0.0   ;;  %v450_v58 = vld [vmem:[%s693_s2] ss:$0 sm:$0xff]  ;;  %s556_s24 = smov [#allocation3]  }
  0x23   :  { %20 = vst [vmem:[#allocation2] sm:$0x3] %v555_v44  ;;  %s409_s25 = sshll.u32 %s556_s24, 4  ;;  %s410_s25 = int_to_ptr.vmem [resolvable:$true] %s409_s25 }
  0x24   :  { %v101_v39 = vsub.s32 %v98_v38, %v100_v36  ;;  %s530_s26 = scalar_lea.vmem %s410_s25, 32  ;;  %p535_p1 = scmp.lt.s32.totalorder %s410_s25, %s410_s25 }
  0x25   :  { %p531_p0 = scmp.ne.s32.totalorder %s410_s25, %s530_s26  ;;  %p536_p2 = scmp.lt.s32.totalorder %s530_s26, %s530_s26 }
  0x26   :  { %v109_v40 = vrot.slane %v95_v37, %v101_v39  ;;  %v102_v41 = vrot.slane %v417_v33, %v101_v39 }
  0x27   :  { %p537_p3 = por %p536_p2, %p535_p1 }
  0x28   :  { %340 = vmatprep.mubr.bf16.mxu0 %v109_v40  ;;  %v111_v42 = vcombine.high %v109_v40, %v109_v40  ;;  %v110_v43 = vcombine.high %v102_v41, %v102_v41 }
  0x29   :  { %341 = vmatmul.mubr.bf16.vlgmr.msra.gmra.mrb[0].mxu0 %v102_v41  ;;  %p538_p4 = pnand %p537_p3, %p531_p0 }
  0x2a   :  { %380 = vmatprep.mubr.bf16.mxu1 %v111_v42  ;;  %v21_v54 = vld [vmem:[#allocation2] sm:$0x3] }
  0x2b   :  { %381 = vmatmul.mubr.bf16.vlgmr.msra.gmra.mrb[0].mxu1 %v110_v43 }
  0xfc   :  { %v467_v45 = vpop.f32.mrb[0].mxu0 }
  0xfd   :  { %v468_v46 = vpop.f32.mrb[1].mxu0 }
  0xfe   :  { %v489_v47 = vpop.f32.mrb[0].mxu1  ;;  %v469_v48 = vadd.f32 %v468_v46, %v467_v45  ;;  %v470_v49 = vpop.f32.mrb[2].mxu0 }
  0xff   :  { %v490_v50 = vpop.f32.mrb[1].mxu1  ;;  %v471_v51 = vpop.f32.mrb[3].mxu0 }
 0x100   :  { %v491_v52 = vadd.f32 %v490_v50, %v489_v47  ;;  %v492_v53 = vpop.f32.mrb[2].mxu1 }
 0x101   :  { %v493_v55 = vpop.f32.mrb[3].mxu1 }
 0x102   :  { %v383_v56 = vadd.f32 %v491_v52, %v469_v48 }
 0x104   :  { %v388_v57 = vadd.f32 %v383_v56, %v21_v54 }
 0x106   :  { %389 = vst [vmem:[#allocation2] sm:$0x3] %v388_v57 }
 0x10d   :  { %v393_v59 = vld [vmem:[#allocation2] sm:$0x3] }
 0x10e   :  { %v401_v60 = vadd.f32 %v450_v58, %v393_v59 }
 0x110   :  { %402 = vst [vmem:[#allocation3] sm:$0x3] %v401_v60 }
 0x111   :  { %541 = shalt.err (!%p538_p4)
}
 0x112   :  { %s542_s29 = scalar_lea.hbm %s694_s3, 32 }
 0x113   :  { %p543_p5 = scmp.ne.s32.totalorder %s694_s3, %s542_s29  ;;  %p546_p6 = scmp.lt.u32.totalorder %s542_s29, %s694_s3 }
 0x115   :  { %p548_p7 = pnand %p546_p6, %p543_p5 }
 0x117   :  { %551 = shalt.err (!%p548_p7)
}
 0x118   :  { %412 = dma.vmem_to_hbm [thread:$0]  %s410_s25, 32, %s694_s3, [#allocation4]  }
 0x119   :  { %552 = dma.done.wait [#allocation4], 32  }
 0x11a   :  { %553 = vsyncadd [#allocation4], 4294967264 }
 0x11b   :  { %416 = vsyncpa [#allocation4], 1 }

</bundles_post_ra>
